<compile_context>
chip_gen: v5e
topology: v5e:2x2
jax: 0.10.0
libtpu: 0.0.40
codegen_flags: <defaults>
</compile_context>

<pallas_src>
import functools

import jax
import jax.numpy as jnp
from jax.experimental import pallas as pl
from jax.experimental.pallas import tpu as pltpu

_BN_EPS = 1e-5
_INV_SQRT2 = 0.7071067811865476
_LANES = 128


def _round_up(v, m):
    return (v + m - 1) // m * m


# ------------------------------ in-kernel math ------------------------------
def _erf(x):
    # Abramowitz & Stegun 7.1.26 (|abs err| <= 1.5e-7); exp/mul/where only.
    # The divide is an EUP approximate reciprocal (free bundle slot) plus one
    # Newton refinement, keeping the VALU chain short at ~f32 accuracy.
    p = 0.3275911
    a1, a2, a3, a4, a5 = (0.254829592, -0.284496736, 1.421413741,
                          -1.453152027, 1.061405429)
    ax = jnp.abs(x)
    d = 1.0 + p * ax
    t = pl.reciprocal(d, approx=True)
    t = t * (2.0 - d * t)                       # Newton step: err -> err^2
    poly = ((((a5 * t + a4) * t + a3) * t + a2) * t + a1) * t
    y = 1.0 - poly * jnp.exp(-ax * ax)
    return jnp.where(x >= 0.0, y, -y)


def _gelu(x):
    # TODO(synk): on v6e/v7x this elementwise chain could run in bf16 (bf16
    # VPU/EUP, ~2x); kept in f32 for the exact-f32 path and for v5e.
    return 0.5 * x * (1.0 + _erf(x * _INV_SQRT2))


# --------------------------------- kernels -----------------------------------
def _conv_stats_kernel(*refs, bn_in):
    """[optional BN+GELU on input] -> Conv1d(k=3, pad=1) on one row tile + stats.

    refs (bn_in=True):  xp, xm, xn, sc, w, b, c, st
    refs (bn_in=False): xp, xm, xn,     w, b, c, st
      xp : (HB, Cin)     halo block ending just before this tile (clamped at 0)
      xm : (TL, Cin)     the tile's rows (conv input)
      xn : (HB, Cin)     halo block starting just after this tile (clamped)
      sc : (2, Cin)      input-BN scale/shift rows (pass 2 only)
      w  : (3*Cin, Cout) fused conv taps, tap-major along K
      b  : (1, Cout)     conv bias
      c  : (TL, Cout)    pre-BN conv output (storage/MXU dtype), halo-free
      st : (2, Cout)     f32 [sum, sum-of-squares] partials for this tile
    """
    if bn_in:
        xp_ref, xm_ref, xn_ref, sc_ref, w_ref, b_ref, c_ref, st_ref = refs
    else:
        xp_ref, xm_ref, xn_ref, w_ref, b_ref, c_ref, st_ref = refs
        sc_ref = None

    ti = pl.program_id(1)
    nt = pl.num_programs(1)
    cin = xm_ref.shape[1]
    hb = xp_ref.shape[0]
    mdt = w_ref.dtype

    main = xm_ref[...]
    prev = xp_ref[pl.ds(hb - 1, 1), :]      # row just before this tile
    nxt = xn_ref[pl.ds(0, 1), :]            # row just after this tile

    if bn_in:
        # Fused BatchNorm (scale/shift precomputed in the wrapper) + GELU on the
        # conv input, including the halo rows borrowed from neighbour tiles.
        scale = sc_ref[pl.ds(0, 1), :]
        shift = sc_ref[pl.ds(1, 1), :]
        main = _gelu(main.astype(jnp.float32) * scale + shift)
        prev = _gelu(prev.astype(jnp.float32) * scale + shift)
        nxt = _gelu(nxt.astype(jnp.float32) * scale + shift)

    # Conv1d(padding=1) zero-pads its *input* (the post-activation tensor), so
    # the sequence-boundary halo rows are literal zeros (applied AFTER BN+GELU).
    prev = jnp.where(ti > 0, prev, jnp.zeros_like(prev))
    nxt = jnp.where(ti < nt - 1, nxt, jnp.zeros_like(nxt))

    main = main.astype(mdt)
    prev = prev.astype(mdt)
    nxt = nxt.astype(mdt)

    # Three accumulating MXU dots on shifted row views.  This removes the
    # (TL, 3*Cin) concat temp that previously serialised in front of the matmul
    # (review item); for realistic channel counts K = Cin already fills the MXU.
    tap_prev = jnp.concatenate([prev, main[:-1]], axis=0)     # input rows t-1
    tap_next = jnp.concatenate([main[1:], nxt], axis=0)       # input rows t+1
    acc = jnp.dot(tap_prev, w_ref[pl.ds(0, cin), :],
                  preferred_element_type=jnp.float32)
    acc += jnp.dot(main, w_ref[pl.ds(cin, cin), :],
                   preferred_element_type=jnp.float32)
    acc += jnp.dot(tap_next, w_ref[pl.ds(2 * cin, cin), :],
                   preferred_element_type=jnp.float32)
    c = acc + b_ref[...]                                       # (TL, Cout) f32

    c_ref[...] = c.astype(c_ref.dtype)                         # halo-free store
    st_ref[...] = jnp.concatenate(
        [jnp.sum(c, axis=0, keepdims=True),
         jnp.sum(c * c, axis=0, keepdims=True)], axis=0)


def _bn_gelu_pool_kernel(c_ref, sc_ref, o_ref):
    """BatchNorm (precomputed scale/shift) -> GELU -> MaxPool1d(2)."""
    rows = c_ref.shape[0]
    scale = sc_ref[pl.ds(0, 1), :]
    shift = sc_ref[pl.ds(1, 1), :]
    # Pooled pairs via aligned strided Ref reads (no (rows//2, 2, C) reshape).
    even = c_ref[pl.ds(0, rows // 2, stride=2), :].astype(jnp.float32)
    odd = c_ref[pl.ds(1, rows // 2, stride=2), :].astype(jnp.float32)
    o_ref[...] = jnp.maximum(_gelu(even * scale + shift),
                             _gelu(odd * scale + shift))


# ----------------------------- pallas_call glue ------------------------------
def _vmem_limit_bytes():
    # v5e/v6e: 128 MiB physical VMEM; v7x: 64 MiB.  Derive the scoped limit from
    # the actual chip instead of a fixed 32 MiB constant.
    cap = 64 * 1024 * 1024
    try:
        info = pltpu.get_tpu_info()
        cap = int(getattr(info, "vmem_capacity_bytes", cap))
    except Exception:
        pass
    return int(min(cap * 3 // 4, 100 * 1024 * 1024))


def _choose_row_tile(l, cin_k, cout_k, itemsize, vmem_limit):
    """Largest row tile (multiple of 16, dividing L) whose working set fits."""
    # Per-row bytes: double-buffered in/out blocks (storage dtype) + the f32
    # accumulator / shifted-tap temps that are live inside the kernel.
    per_row = 2 * 2 * itemsize * (cin_k + cout_k) + 4 * (3 * cin_k + 2 * cout_k)
    target = (vmem_limit // 4) // max(per_row, 1)
    target = max(64, min(1024, target))
    target -= target % 16
    if l <= target:
        return l
    for tl in range(target, 15, -16):
        if l % tl == 0:
            return tl
    # TODO(synk): for ragged L with no 16-multiple divisor <= target, fall back
    # to one full-length tile; pl.BoundedSlice row tiling would remove this.
    return l


def _compiler_params(vmem_limit):
    return pltpu.CompilerParams(dimension_semantics=("parallel", "parallel"),
                                vmem_limit_bytes=vmem_limit)


def _conv_stats(x, sc, w, b, *, tl, bn_in, out_dtype, vmem_limit):
    n, l, cin = x.shape
    cout = w.shape[1]
    nt = l // tl
    hb = 8 if l >= 8 else l                       # halo-block row count
    maxb = (l + hb - 1) // hb - 1                 # last valid halo-block index

    # Clamped halo index maps: at the sequence boundaries the fetched rows are
    # unused (the kernel zeroes them), so clamping to a valid block is safe.
    def prev_map(bi, ti):
        return (bi, jnp.maximum(ti * (tl // hb) - 1, 0), 0)

    def next_map(bi, ti):
        return (bi, jnp.minimum((ti + 1) * (tl // hb), maxb), 0)

    in_specs = [
        pl.BlockSpec((None, hb, cin), prev_map),
        pl.BlockSpec((None, tl, cin), lambda bi, ti: (bi, ti, 0)),
        pl.BlockSpec((None, hb, cin), next_map),
    ]
    args = [x, x, x]
    if bn_in:
        in_specs.append(pl.BlockSpec((2, cin), lambda bi, ti: (0, 0)))
        args.append(sc)
    # Resident operands (constant index).  (pipeline_mode=pl.Buffered(1) would
    # shave a little more VMEM headroom on v7x.)
    in_specs += [
        pl.BlockSpec((3 * cin, cout), lambda bi, ti: (0, 0)),
        pl.BlockSpec((1, cout), lambda bi, ti: (0, 0)),
    ]
    args += [w, b]

    gelu_elems = n * l * cin if bn_in else 0
    cost = pl.CostEstimate(
        flops=2 * n * l * 3 * cin * cout,
        transcendentals=2 * gelu_elems,           # exp + approx reciprocal
        bytes_accessed=(int(x.nbytes) + int(w.nbytes) + int(b.nbytes)
                        + n * l * cout * jnp.dtype(out_dtype).itemsize
                        + n * nt * 2 * cout * 4))

    return pl.pallas_call(
        functools.partial(_conv_stats_kernel, bn_in=bn_in),
        grid=(n, nt),
        in_specs=in_specs,
        out_specs=[
            pl.BlockSpec((None, tl, cout), lambda bi, ti: (bi, ti, 0)),
            pl.BlockSpec((None, 2, cout), lambda bi, ti: (bi * nt + ti, 0, 0)),
        ],
        out_shape=[
            jax.ShapeDtypeStruct((n, l, cout), out_dtype),
            jax.ShapeDtypeStruct((n * nt, 2, cout), jnp.float32),
        ],
        compiler_params=_compiler_params(vmem_limit),
        cost_estimate=cost,
    )(*args)


def _bn_gelu_pool(c, sc, *, tl, vmem_limit):
    n, l, cout = c.shape
    nt = l // tl
    cost = pl.CostEstimate(
        flops=20 * n * l * cout,
        transcendentals=2 * n * l * cout,
        bytes_accessed=int(c.nbytes) + int(sc.nbytes) + n * (l // 2) * cout * 4)
    return pl.pallas_call(
        _bn_gelu_pool_kernel,
        grid=(n, nt),
        in_specs=[
            pl.BlockSpec((None, tl, cout), lambda bi, ti: (bi, ti, 0)),
            pl.BlockSpec((2, cout), lambda bi, ti: (0, 0)),
        ],
        out_specs=pl.BlockSpec((None, tl // 2, cout), lambda bi, ti: (bi, ti, 0)),
        out_shape=jax.ShapeDtypeStruct((n, l // 2, cout), jnp.float32),
        compiler_params=_compiler_params(vmem_limit),
        cost_estimate=cost,
    )(c, sc)


# -------------------------------- host glue ----------------------------------
def _fuse_weight(w, cin_pad, cout_pad, dtype):
    """PyTorch Conv1d weight (Co, Ci, 3) -> fused (3*Cin_pad, Cout_pad)."""
    co, ci, _ = w.shape
    wt = jnp.transpose(w, (2, 1, 0))                          # (3, Ci, Co)
    wt = jnp.pad(wt, ((0, 0), (0, cin_pad - ci), (0, cout_pad - co)))
    return wt.reshape(3 * cin_pad, cout_pad).astype(dtype)


def _pad_row(v, cpad):
    return jnp.pad(v, (0, cpad - v.shape[0])).reshape(1, cpad).astype(jnp.float32)


def _bn_scale_shift(stats, gamma, beta, cpad, count):
    """Per-(batch,tile) (sum, sumsq) partials -> per-channel BN scale/shift."""
    tot = jnp.sum(stats, axis=0)                              # (2, Cpad)
    mean = tot[0] / count
    var = jnp.maximum(tot[1] / count - mean * mean, 0.0)      # biased (training)
    inv = jax.lax.rsqrt(var + _BN_EPS)
    g = jnp.pad(gamma, (0, cpad - gamma.shape[0]))            # padded chans -> 0
    b = jnp.pad(beta, (0, cpad - beta.shape[0]))
    scale = g * inv
    shift = b - mean * scale
    return jnp.stack([scale, shift], axis=0).astype(jnp.float32)


def unet_down(x_ncl, params, *, mxu_dtype=jnp.bfloat16):
    """x_ncl: (N, Cin, L) f32 -> (N, Cout, L//2) f32 (PyTorch NCL layout)."""
    (w1, b1, g1, be1), (w2, b2, g2, be2) = params
    n, ci, l = x_ncl.shape
    co = w1.shape[0]
    assert l % 2 == 0, "MaxPool1d(2) path requires an even length"
    cop = _round_up(co, _LANES)          # lane-dense intermediate channels

    vmem_limit = _vmem_limit_bytes()
    tl = _choose_row_tile(l, cop, cop, jnp.dtype(mxu_dtype).itemsize, vmem_limit)

    # NCL -> channel-last (N, L, Cin) at the TRUE channel count: no channel-
    # padded copy of x in HBM (the matmul K dim absorbs a small Cin directly).
    # TODO(synk): a channels-last end-to-end network would drop this transpose
    # and the final one entirely.
    x_nlc = jnp.transpose(x_ncl, (0, 2, 1)).astype(mxu_dtype)

    w1f = _fuse_weight(w1, ci, cop, mxu_dtype)     # (3*Cin, Cout_pad)
    w2f = _fuse_weight(w2, cop, cop, mxu_dtype)    # (3*Cout_pad, Cout_pad)
    b1r = _pad_row(b1, cop)
    b2r = _pad_row(b2, cop)
    count = n * l

    # Pass 1: conv1 -> halo-free pre-BN output (mxu dtype) + BN1 batch stats.
    c1, st1 = _conv_stats(x_nlc, None, w1f, b1r, tl=tl, bn_in=False,
                          out_dtype=mxu_dtype, vmem_limit=vmem_limit)
    sc1 = _bn_scale_shift(st1, g1, be1, cop, count)

    # Pass 2: BN1+GELU fused on the fly -> conv2 + BN2 batch stats.
    c2, st2 = _conv_stats(c1, sc1, w2f, b2r, tl=tl, bn_in=True,
                          out_dtype=mxu_dtype, vmem_limit=vmem_limit)
    sc2 = _bn_scale_shift(st2, g2, be2, cop, count)

    # Pass 3: BN2 + GELU + MaxPool1d(2).
    y = _bn_gelu_pool(c2, sc2, tl=tl, vmem_limit=vmem_limit)   # (N, L//2, Cop)

    return jnp.transpose(y[:, :, :co], (0, 2, 1))              # (N, Co, L//2)


# ---------------- pure-JAX reference (for correctness check) -----------------
def _ref_unet_down(x, params):
    def block(x, w, b, g, be):
        y = jax.lax.conv_general_dilated(
            x, w, window_strides=(1,), padding=((1, 1),),
            dimension_numbers=('NCH', 'OIH', 'NCH'))
        y = y + b[None, :, None]
        m = jnp.mean(y, axis=(0, 2), keepdims=True)
        v = jnp.mean((y - m) ** 2, axis=(0, 2), keepdims=True)
        y = (y - m) / jnp.sqrt(v + _BN_EPS) * g[None, :, None] + be[None, :, None]
        return 0.5 * y * (1.0 + jax.scipy.special.erf(y * _INV_SQRT2))

    (w1, b1, g1, be1), (w2, b2, g2, be2) = params
    y = block(x, w1, b1, g1, be1)
    y = block(y, w2, b2, g2, be2)
    nn_, cc_, ll_ = y.shape
    return jnp.max(y.reshape(nn_, cc_, ll_ // 2, 2), axis=-1)


if __name__ == "__main__":
    key = jax.random.PRNGKey(0)
    n, ci, co, l = 2, 4, 8, 16
    ks = jax.random.split(key, 7)
    x = jax.random.normal(ks[0], (n, ci, l), jnp.float32)

    # Deterministic synthetic parameters (shapes from the nn.Module __init__).
    w1 = 0.2 * jax.random.normal(ks[1], (co, ci, 3), jnp.float32)   # Conv1d 1
    b1 = 0.1 * jax.random.normal(ks[2], (co,), jnp.float32)
    g1 = 1.0 + 0.1 * jax.random.normal(ks[3], (co,), jnp.float32)   # BN1 gamma
    be1 = 0.1 * jax.random.normal(ks[4], (co,), jnp.float32)        # BN1 beta
    w2 = 0.2 * jax.random.normal(ks[5], (co, co, 3), jnp.float32)   # Conv1d 2
    b2 = 0.1 * jax.random.normal(ks[6], (co,), jnp.float32)
    g2 = jnp.ones((co,), jnp.float32)                               # BN2 gamma
    be2 = jnp.zeros((co,), jnp.float32)                             # BN2 beta
    params = ((w1, b1, g1, be1), (w2, b2, g2, be2))

    ref = _ref_unet_down(x, params)

    # f32 MXU path: strict check (all intermediates exact f32).
    out_f32 = jax.block_until_ready(
        jax.jit(functools.partial(unet_down, mxu_dtype=jnp.float32))(x, params))
    assert out_f32.shape == (n, co, l // 2), out_f32.shape
    err32 = float(jnp.max(jnp.abs(out_f32 - ref)))
    assert jnp.allclose(out_f32, ref, atol=2e-3, rtol=2e-3), err32

    # bf16 MXU operands + bf16 intermediates (perf default): looser tolerance.
    out_bf16 = jax.block_until_ready(
        jax.jit(functools.partial(unet_down, mxu_dtype=jnp.bfloat16))(x, params))
    err16 = float(jnp.max(jnp.abs(out_bf16 - ref)))
    assert jnp.allclose(out_bf16, ref, atol=5e-2, rtol=5e-2), err16

    print("KERNEL_OK")
</pallas_src>

<mosaic_0001>
module attributes {stable_mosaic.version = 11 : i64} {
  func.func @_conv_stats_kernel(%arg0: i32, %arg1: i32, %arg2: memref<1x8x4xf32, #tpu.memory_space<vmem>>, %arg3: memref<1x16x4xf32, #tpu.memory_space<vmem>>, %arg4: memref<1x8x4xf32, #tpu.memory_space<vmem>>, %arg5: memref<12x128xf32, #tpu.memory_space<vmem>>, %arg6: memref<1x128xf32, #tpu.memory_space<vmem>>, %arg7: memref<1x16x128xf32, #tpu.memory_space<vmem>>, %arg8: memref<1x2x128xf32, #tpu.memory_space<vmem>>) attributes {dimension_semantics = [#tpu.dimension_semantics<parallel>, #tpu.dimension_semantics<parallel>], iteration_bounds = array<i64: 2, 1>, scalar_prefetch = 0 : i64, scratch_operands = 0 : i64, tpu.core_type = #tpu.core_type<tc>, window_params = [{transform_indices = @transform_0, window_bounds = array<i64: 1, 8, 4>}, {transform_indices = @transform_1, window_bounds = array<i64: 1, 16, 4>}, {transform_indices = @transform_2, window_bounds = array<i64: 1, 8, 4>}, {pipeline_mode = #tpu.pipeline_mode<synchronous>, transform_indices = @transform_3, window_bounds = array<i64: 12, 128>}, {pipeline_mode = #tpu.pipeline_mode<synchronous>, transform_indices = @transform_4, window_bounds = array<i64: 1, 128>}, {transform_indices = @transform_5, window_bounds = array<i64: 1, 16, 128>}, {transform_indices = @transform_6, window_bounds = array<i64: 1, 2, 128>}]} {
    %c0 = arith.constant 0 : index
    %c0_0 = arith.constant 0 : index
    %c0_1 = arith.constant 0 : index
    %0 = vector.load %arg3[%c0, %c0_0, %c0_1] : memref<1x16x4xf32, #tpu.memory_space<vmem>>, vector<1x16x4xf32>
    %1 = vector.shape_cast %0 : vector<1x16x4xf32> to vector<16x4xf32>
    %c0_2 = arith.constant 0 : index
    %c7 = arith.constant 7 : index
    %c0_3 = arith.constant 0 : index
    %2 = vector.load %arg2[%c0_2, %c7, %c0_3] : memref<1x8x4xf32, #tpu.memory_space<vmem>>, vector<1x1x4xf32>
    %3 = vector.shape_cast %2 : vector<1x1x4xf32> to vector<1x4xf32>
    %c0_4 = arith.constant 0 : index
    %c0_5 = arith.constant 0 : index
    %c0_6 = arith.constant 0 : index
    %4 = vector.load %arg4[%c0_4, %c0_5, %c0_6] : memref<1x8x4xf32, #tpu.memory_space<vmem>>, vector<1x1x4xf32>
    %5 = vector.shape_cast %4 : vector<1x1x4xf32> to vector<1x4xf32>
    %c0_i32 = arith.constant 0 : i32
    %6 = arith.cmpi sgt, %arg1, %c0_i32 : i32
    %cst = arith.constant 0.000000e+00 : f32
    %7 = vector.broadcast %cst : f32 to vector<1x4xf32>
    %8 = arith.select %6, %3, %7 : vector<1x4xf32>
    %c0_i32_7 = arith.constant 0 : i32
    %9 = arith.cmpi slt, %arg1, %c0_i32_7 : i32
    %cst_8 = arith.constant 0.000000e+00 : f32
    %10 = vector.broadcast %cst_8 : f32 to vector<1x4xf32>
    %11 = arith.select %9, %5, %10 : vector<1x4xf32>
    %12 = vector.extract_strided_slice %1 {offsets = [0, 0], sizes = [15, 4], strides = [1, 1]} : vector<16x4xf32> to vector<15x4xf32>
    %13 = tpu.concatenate %8, %12 in 0 : vector<1x4xf32>, vector<15x4xf32> -> vector<16x4xf32>
    %14 = vector.extract_strided_slice %1 {offsets = [1, 0], sizes = [15, 4], strides = [1, 1]} : vector<16x4xf32> to vector<15x4xf32>
    %15 = tpu.concatenate %14, %11 in 0 : vector<15x4xf32>, vector<1x4xf32> -> vector<16x4xf32>
    %c0_9 = arith.constant 0 : index
    %c0_10 = arith.constant 0 : index
    %16 = vector.load %arg5[%c0_9, %c0_10] : memref<12x128xf32, #tpu.memory_space<vmem>>, vector<4x128xf32>
    %cst_11 = arith.constant dense<0.000000e+00> : vector<16x128xf32>
    %17 = tpu.matmul %13, %16, %cst_11 {dimension_numbers = #tpu.dot_dimension_numbers<[1], [0], [0], [1], [0, 0, 1, 1], [], []>} : vector<16x4xf32>, vector<4x128xf32>, vector<16x128xf32> -> vector<16x128xf32>
    %c4 = arith.constant 4 : index
    %c0_12 = arith.constant 0 : index
    %18 = vector.load %arg5[%c4, %c0_12] : memref<12x128xf32, #tpu.memory_space<vmem>>, vector<4x128xf32>
    %cst_13 = arith.constant dense<0.000000e+00> : vector<16x128xf32>
    %19 = tpu.matmul %1, %18, %cst_13 {dimension_numbers = #tpu.dot_dimension_numbers<[1], [0], [0], [1], [0, 0, 1, 1], [], []>} : vector<16x4xf32>, vector<4x128xf32>, vector<16x128xf32> -> vector<16x128xf32>
    %20 = arith.addf %17, %19 : vector<16x128xf32>
    %c8 = arith.constant 8 : index
    %c0_14 = arith.constant 0 : index
    %21 = vector.load %arg5[%c8, %c0_14] : memref<12x128xf32, #tpu.memory_space<vmem>>, vector<4x128xf32>
    %cst_15 = arith.constant dense<0.000000e+00> : vector<16x128xf32>
    %22 = tpu.matmul %15, %21, %cst_15 {dimension_numbers = #tpu.dot_dimension_numbers<[1], [0], [0], [1], [0, 0, 1, 1], [], []>} : vector<16x4xf32>, vector<4x128xf32>, vector<16x128xf32> -> vector<16x128xf32>
    %23 = arith.addf %20, %22 : vector<16x128xf32>
    %c0_16 = arith.constant 0 : index
    %c0_17 = arith.constant 0 : index
    %24 = vector.load %arg6[%c0_16, %c0_17] : memref<1x128xf32, #tpu.memory_space<vmem>>, vector<1x128xf32>
    %25 = vector.broadcast %24 : vector<1x128xf32> to vector<16x128xf32>
    %26 = arith.addf %23, %25 : vector<16x128xf32>
    %c0_18 = arith.constant 0 : index
    %c0_19 = arith.constant 0 : index
    %c0_20 = arith.constant 0 : index
    %27 = vector.load %arg7[%c0_18, %c0_19, %c0_20] : memref<1x16x128xf32, #tpu.memory_space<vmem>>, vector<1x16x128xf32>
    %28 = vector.shape_cast %27 : vector<1x16x128xf32> to vector<16x128xf32>
    %29 = vector.shape_cast %26 : vector<16x128xf32> to vector<1x16x128xf32>
    tpu.vector_store %arg7[%c0_18, %c0_19, %c0_20], %29 {strides = array<i32>} : memref<1x16x128xf32, #tpu.memory_space<vmem>>, vector<1x16x128xf32>,
    %cst_21 = arith.constant dense<0.000000e+00> : vector<128xf32>
    %30 = vector.multi_reduction <add>, %26, %cst_21 [0] : vector<16x128xf32> to vector<128xf32>
    %31 = vector.shape_cast %30 : vector<128xf32> to vector<1x128xf32>
    %32 = arith.mulf %26, %26 : vector<16x128xf32>
    %cst_22 = arith.constant dense<0.000000e+00> : vector<128xf32>
    %33 = vector.multi_reduction <add>, %32, %cst_22 [0] : vector<16x128xf32> to vector<128xf32>
    %34 = vector.shape_cast %33 : vector<128xf32> to vector<1x128xf32>
    %35 = tpu.concatenate %31, %34 in 0 : vector<1x128xf32>, vector<1x128xf32> -> vector<2x128xf32>
    %c0_23 = arith.constant 0 : index
    %c0_24 = arith.constant 0 : index
    %c0_25 = arith.constant 0 : index
    %36 = vector.load %arg8[%c0_23, %c0_24, %c0_25] : memref<1x2x128xf32, #tpu.memory_space<vmem>>, vector<1x2x128xf32>
    %37 = vector.shape_cast %36 : vector<1x2x128xf32> to vector<2x128xf32>
    %38 = vector.shape_cast %35 : vector<2x128xf32> to vector<1x2x128xf32>
    tpu.vector_store %arg8[%c0_23, %c0_24, %c0_25], %38 {strides = array<i32>} : memref<1x2x128xf32, #tpu.memory_space<vmem>>, vector<1x2x128xf32>,
    return
  }
  func.func @transform_0(%arg0: i32, %arg1: i32) -> (i32, i32, i32) {
    %c2_i32 = arith.constant 2 : i32
    %0 = arith.muli %arg1, %c2_i32 : i32
    %c1_i32 = arith.constant 1 : i32
    %1 = arith.subi %0, %c1_i32 : i32
    %c0_i32 = arith.constant 0 : i32
    %2 = arith.maxsi %1, %c0_i32 : i32
    %c0_i32_0 = arith.constant 0 : i32
    %c0_i32_1 = arith.constant 0 : i32
    return %arg0, %2, %c0_i32_0 : i32, i32, i32
  }
  func.func @transform_1(%arg0: i32, %arg1: i32) -> (i32, i32, i32) {
    %c0_i32 = arith.constant 0 : i32
    %c0_i32_0 = arith.constant 0 : i32
    return %arg0, %arg1, %c0_i32 : i32, i32, i32
  }
  func.func @transform_2(%arg0: i32, %arg1: i32) -> (i32, i32, i32) {
    %c1_i32 = arith.constant 1 : i32
    %0 = arith.addi %arg1, %c1_i32 : i32
    %c2_i32 = arith.constant 2 : i32
    %1 = arith.muli %0, %c2_i32 : i32
    %c1_i32_0 = arith.constant 1 : i32
    %2 = arith.minsi %1, %c1_i32_0 : i32
    %c0_i32 = arith.constant 0 : i32
    %c0_i32_1 = arith.constant 0 : i32
    return %arg0, %2, %c0_i32 : i32, i32, i32
  }
  func.func @transform_3(%arg0: i32, %arg1: i32) -> (i32, i32) {
    %c0_i32 = arith.constant 0 : i32
    %c0_i32_0 = arith.constant 0 : i32
    %c0_i32_1 = arith.constant 0 : i32
    return %c0_i32, %c0_i32_0 : i32, i32
  }
  func.func @transform_4(%arg0: i32, %arg1: i32) -> (i32, i32) {
    %c0_i32 = arith.constant 0 : i32
    %c0_i32_0 = arith.constant 0 : i32
    %c0_i32_1 = arith.constant 0 : i32
    return %c0_i32, %c0_i32_0 : i32, i32
  }
  func.func @transform_5(%arg0: i32, %arg1: i32) -> (i32, i32, i32) {
    %c0_i32 = arith.constant 0 : i32
    %c0_i32_0 = arith.constant 0 : i32
    return %arg0, %arg1, %c0_i32 : i32, i32, i32
  }
  func.func @transform_6(%arg0: i32, %arg1: i32) -> (i32, i32, i32) {
    %c1_i32 = arith.constant 1 : i32
    %0 = arith.muli %arg0, %c1_i32 : i32
    %1 = arith.addi %0, %arg1 : i32
    %c0_i32 = arith.constant 0 : i32
    %c0_i32_0 = arith.constant 0 : i32
    %c0_i32_1 = arith.constant 0 : i32
    return %1, %c0_i32, %c0_i32_0 : i32, i32, i32
  }
}

module attributes {stable_mosaic.version = 11 : i64} {
  func.func @_bn_gelu_pool_kernel(%arg0: i32, %arg1: i32, %arg2: memref<1x16x128xf32, #tpu.memory_space<vmem>>, %arg3: memref<2x128xf32, #tpu.memory_space<vmem>>, %arg4: memref<1x8x128xf32, #tpu.memory_space<vmem>>) attributes {dimension_semantics = [#tpu.dimension_semantics<parallel>, #tpu.dimension_semantics<parallel>], iteration_bounds = array<i64: 2, 1>, scalar_prefetch = 0 : i64, scratch_operands = 0 : i64, tpu.core_type = #tpu.core_type<tc>, window_params = [{transform_indices = @transform_0, window_bounds = array<i64: 1, 16, 128>}, {pipeline_mode = #tpu.pipeline_mode<synchronous>, transform_indices = @transform_1, window_bounds = array<i64: 2, 128>}, {transform_indices = @transform_2, window_bounds = array<i64: 1, 8, 128>}]} {
    %c0 = arith.constant 0 : index
    %c0_0 = arith.constant 0 : index
    %0 = vector.load %arg3[%c0, %c0_0] : memref<2x128xf32, #tpu.memory_space<vmem>>, vector<1x128xf32>
    %c1 = arith.constant 1 : index
    %c0_1 = arith.constant 0 : index
    %1 = vector.load %arg3[%c1, %c0_1] : memref<2x128xf32, #tpu.memory_space<vmem>>, vector<1x128xf32>
    %c0_2 = arith.constant 0 : index
    %c0_3 = arith.constant 0 : index
    %c0_4 = arith.constant 0 : index
    %2 = tpu.strided_load %arg2[%c0_2, %c0_3, %c0_4] {strides = array<i32: 1, 2, 1>} : memref<1x16x128xf32, #tpu.memory_space<vmem>>, vector<1x8x128xf32>
    %3 = vector.shape_cast %2 : vector<1x8x128xf32> to vector<8x128xf32>
    %c0_5 = arith.constant 0 : index
    %c1_6 = arith.constant 1 : index
    %c0_7 = arith.constant 0 : index
    %4 = tpu.strided_load %arg2[%c0_5, %c1_6, %c0_7] {strides = array<i32: 1, 2, 1>} : memref<1x16x128xf32, #tpu.memory_space<vmem>>, vector<1x8x128xf32>
    %5 = vector.shape_cast %4 : vector<1x8x128xf32> to vector<8x128xf32>
    %6 = vector.broadcast %0 : vector<1x128xf32> to vector<8x128xf32>
    %7 = arith.mulf %3, %6 : vector<8x128xf32>
    %8 = vector.broadcast %1 : vector<1x128xf32> to vector<8x128xf32>
    %9 = arith.addf %7, %8 : vector<8x128xf32>
    %cst = arith.constant 5.000000e-01 : f32
    %10 = vector.broadcast %cst : f32 to vector<8x128xf32>
    %11 = arith.mulf %10, %9 : vector<8x128xf32>
    %cst_8 = arith.constant 0.707106769 : f32
    %12 = vector.broadcast %cst_8 : f32 to vector<8x128xf32>
    %13 = arith.mulf %9, %12 : vector<8x128xf32>
    %14 = math.absf %13 : vector<8x128xf32>
    %cst_9 = arith.constant 0.327591091 : f32
    %15 = vector.broadcast %cst_9 : f32 to vector<8x128xf32>
    %16 = arith.mulf %15, %14 : vector<8x128xf32>
    %cst_10 = arith.constant 1.000000e+00 : f32
    %17 = vector.broadcast %cst_10 : f32 to vector<8x128xf32>
    %18 = arith.addf %17, %16 : vector<8x128xf32>
    %19 = tpu.reciprocal %18 {approx = true} : vector<8x128xf32> -> vector<8x128xf32>
    %20 = arith.mulf %18, %19 : vector<8x128xf32>
    %cst_11 = arith.constant 2.000000e+00 : f32
    %21 = vector.broadcast %cst_11 : f32 to vector<8x128xf32>
    %22 = arith.subf %21, %20 : vector<8x128xf32>
    %23 = arith.mulf %19, %22 : vector<8x128xf32>
    %cst_12 = arith.constant 1.06140542 : f32
    %24 = vector.broadcast %cst_12 : f32 to vector<8x128xf32>
    %25 = arith.mulf %24, %23 : vector<8x128xf32>
    %cst_13 = arith.constant -1.45315206 : f32
    %26 = vector.broadcast %cst_13 : f32 to vector<8x128xf32>
    %27 = arith.addf %25, %26 : vector<8x128xf32>
    %28 = arith.mulf %27, %23 : vector<8x128xf32>
    %cst_14 = arith.constant 1.42141378 : f32
    %29 = vector.broadcast %cst_14 : f32 to vector<8x128xf32>
    %30 = arith.addf %28, %29 : vector<8x128xf32>
    %31 = arith.mulf %30, %23 : vector<8x128xf32>
    %cst_15 = arith.constant -0.284496725 : f32
    %32 = vector.broadcast %cst_15 : f32 to vector<8x128xf32>
    %33 = arith.addf %31, %32 : vector<8x128xf32>
    %34 = arith.mulf %33, %23 : vector<8x128xf32>
    %cst_16 = arith.constant 0.254829586 : f32
    %35 = vector.broadcast %cst_16 : f32 to vector<8x128xf32>
    %36 = arith.addf %34, %35 : vector<8x128xf32>
    %37 = arith.mulf %36, %23 : vector<8x128xf32>
    %cst_17 = arith.constant 0.000000e+00 : f32
    %38 = vector.broadcast %cst_17 : f32 to vector<8x128xf32>
    %39 = arith.subf %38, %14 : vector<8x128xf32>
    %40 = arith.mulf %39, %14 : vector<8x128xf32>
    %41 = math.exp %40 : vector<8x128xf32>
    %42 = arith.mulf %37, %41 : vector<8x128xf32>
    %cst_18 = arith.constant 1.000000e+00 : f32
    %43 = vector.broadcast %cst_18 : f32 to vector<8x128xf32>
    %44 = arith.subf %43, %42 : vector<8x128xf32>
    %cst_19 = arith.constant 0.000000e+00 : f32
    %45 = vector.broadcast %cst_19 : f32 to vector<8x128xf32>
    %46 = arith.cmpf oge, %13, %45 : vector<8x128xf32>
    %cst_20 = arith.constant 0.000000e+00 : f32
    %47 = vector.broadcast %cst_20 : f32 to vector<8x128xf32>
    %48 = arith.subf %47, %44 : vector<8x128xf32>
    %49 = arith.select %46, %44, %48 : vector<8x128xi1>, vector<8x128xf32>
    %cst_21 = arith.constant 1.000000e+00 : f32
    %50 = vector.broadcast %cst_21 : f32 to vector<8x128xf32>
    %51 = arith.addf %50, %49 : vector<8x128xf32>
    %52 = arith.mulf %11, %51 : vector<8x128xf32>
    %53 = vector.broadcast %0 : vector<1x128xf32> to vector<8x128xf32>
    %54 = arith.mulf %5, %53 : vector<8x128xf32>
    %55 = vector.broadcast %1 : vector<1x128xf32> to vector<8x128xf32>
    %56 = arith.addf %54, %55 : vector<8x128xf32>
    %cst_22 = arith.constant 5.000000e-01 : f32
    %57 = vector.broadcast %cst_22 : f32 to vector<8x128xf32>
    %58 = arith.mulf %57, %56 : vector<8x128xf32>
    %cst_23 = arith.constant 0.707106769 : f32
    %59 = vector.broadcast %cst_23 : f32 to vector<8x128xf32>
    %60 = arith.mulf %56, %59 : vector<8x128xf32>
    %61 = math.absf %60 : vector<8x128xf32>
    %cst_24 = arith.constant 0.327591091 : f32
    %62 = vector.broadcast %cst_24 : f32 to vector<8x128xf32>
    %63 = arith.mulf %62, %61 : vector<8x128xf32>
    %cst_25 = arith.constant 1.000000e+00 : f32
    %64 = vector.broadcast %cst_25 : f32 to vector<8x128xf32>
    %65 = arith.addf %64, %63 : vector<8x128xf32>
    %66 = tpu.reciprocal %65 {approx = true} : vector<8x128xf32> -> vector<8x128xf32>
    %67 = arith.mulf %65, %66 : vector<8x128xf32>
    %cst_26 = arith.constant 2.000000e+00 : f32
    %68 = vector.broadcast %cst_26 : f32 to vector<8x128xf32>
    %69 = arith.subf %68, %67 : vector<8x128xf32>
    %70 = arith.mulf %66, %69 : vector<8x128xf32>
    %cst_27 = arith.constant 1.06140542 : f32
    %71 = vector.broadcast %cst_27 : f32 to vector<8x128xf32>
    %72 = arith.mulf %71, %70 : vector<8x128xf32>
    %cst_28 = arith.constant -1.45315206 : f32
    %73 = vector.broadcast %cst_28 : f32 to vector<8x128xf32>
    %74 = arith.addf %72, %73 : vector<8x128xf32>
    %75 = arith.mulf %74, %70 : vector<8x128xf32>
    %cst_29 = arith.constant 1.42141378 : f32
    %76 = vector.broadcast %cst_29 : f32 to vector<8x128xf32>
    %77 = arith.addf %75, %76 : vector<8x128xf32>
    %78 = arith.mulf %77, %70 : vector<8x128xf32>
    %cst_30 = arith.constant -0.284496725 : f32
    %79 = vector.broadcast %cst_30 : f32 to vector<8x128xf32>
    %80 = arith.addf %78, %79 : vector<8x128xf32>
    %81 = arith.mulf %80, %70 : vector<8x128xf32>
    %cst_31 = arith.constant 0.254829586 : f32
    %82 = vector.broadcast %cst_31 : f32 to vector<8x128xf32>
    %83 = arith.addf %81, %82 : vector<8x128xf32>
    %84 = arith.mulf %83, %70 : vector<8x128xf32>
    %cst_32 = arith.constant 0.000000e+00 : f32
    %85 = vector.broadcast %cst_32 : f32 to vector<8x128xf32>
    %86 = arith.subf %85, %61 : vector<8x128xf32>
    %87 = arith.mulf %86, %61 : vector<8x128xf32>
    %88 = math.exp %87 : vector<8x128xf32>
    %89 = arith.mulf %84, %88 : vector<8x128xf32>
    %cst_33 = arith.constant 1.000000e+00 : f32
    %90 = vector.broadcast %cst_33 : f32 to vector<8x128xf32>
    %91 = arith.subf %90, %89 : vector<8x128xf32>
    %cst_34 = arith.constant 0.000000e+00 : f32
    %92 = vector.broadcast %cst_34 : f32 to vector<8x128xf32>
    %93 = arith.cmpf oge, %60, %92 : vector<8x128xf32>
    %cst_35 = arith.constant 0.000000e+00 : f32
    %94 = vector.broadcast %cst_35 : f32 to vector<8x128xf32>
    %95 = arith.subf %94, %91 : vector<8x128xf32>
    %96 = arith.select %93, %91, %95 : vector<8x128xi1>, vector<8x128xf32>
    %cst_36 = arith.constant 1.000000e+00 : f32
    %97 = vector.broadcast %cst_36 : f32 to vector<8x128xf32>
    %98 = arith.addf %97, %96 : vector<8x128xf32>
    %99 = arith.mulf %58, %98 : vector<8x128xf32>
    %100 = arith.maximumf %52, %99 : vector<8x128xf32>
    %c0_37 = arith.constant 0 : index
    %c0_38 = arith.constant 0 : index
    %c0_39 = arith.constant 0 : index
    %101 = vector.load %arg4[%c0_37, %c0_38, %c0_39] : memref<1x8x128xf32, #tpu.memory_space<vmem>>, vector<1x8x128xf32>
    %102 = vector.shape_cast %101 : vector<1x8x128xf32> to vector<8x128xf32>
    %103 = vector.shape_cast %100 : vector<8x128xf32> to vector<1x8x128xf32>
    tpu.vector_store %arg4[%c0_37, %c0_38, %c0_39], %103 {strides = array<i32>} : memref<1x8x128xf32, #tpu.memory_space<vmem>>, vector<1x8x128xf32>,
    return
  }
  func.func @transform_0(%arg0: i32, %arg1: i32) -> (i32, i32, i32) {
    %c0_i32 = arith.constant 0 : i32
    %c0_i32_0 = arith.constant 0 : i32
    return %arg0, %arg1, %c0_i32 : i32, i32, i32
  }
  func.func @transform_1(%arg0: i32, %arg1: i32) -> (i32, i32) {
    %c0_i32 = arith.constant 0 : i32
    %c0_i32_0 = arith.constant 0 : i32
    %c0_i32_1 = arith.constant 0 : i32
    return %c0_i32, %c0_i32_0 : i32, i32
  }
  func.func @transform_2(%arg0: i32, %arg1: i32) -> (i32, i32, i32) {
    %c0_i32 = arith.constant 0 : i32
    %c0_i32_0 = arith.constant 0 : i32
    return %arg0, %arg1, %c0_i32 : i32, i32, i32
  }
}

module attributes {stable_mosaic.version = 11 : i64} {
  func.func @_conv_stats_kernel(%arg0: i32, %arg1: i32, %arg2: memref<1x8x128xf32, #tpu.memory_space<vmem>>, %arg3: memref<1x16x128xf32, #tpu.memory_space<vmem>>, %arg4: memref<1x8x128xf32, #tpu.memory_space<vmem>>, %arg5: memref<2x128xf32, #tpu.memory_space<vmem>>, %arg6: memref<384x128xf32, #tpu.memory_space<vmem>>, %arg7: memref<1x128xf32, #tpu.memory_space<vmem>>, %arg8: memref<1x16x128xf32, #tpu.memory_space<vmem>>, %arg9: memref<1x2x128xf32, #tpu.memory_space<vmem>>) attributes {dimension_semantics = [#tpu.dimension_semantics<parallel>, #tpu.dimension_semantics<parallel>], iteration_bounds = array<i64: 2, 1>, scalar_prefetch = 0 : i64, scratch_operands = 0 : i64, tpu.core_type = #tpu.core_type<tc>, window_params = [{transform_indices = @transform_0, window_bounds = array<i64: 1, 8, 128>}, {transform_indices = @transform_1, window_bounds = array<i64: 1, 16, 128>}, {transform_indices = @transform_2, window_bounds = array<i64: 1, 8, 128>}, {pipeline_mode = #tpu.pipeline_mode<synchronous>, transform_indices = @transform_3, window_bounds = array<i64: 2, 128>}, {pipeline_mode = #tpu.pipeline_mode<synchronous>, transform_indices = @transform_4, window_bounds = array<i64: 384, 128>}, {pipeline_mode = #tpu.pipeline_mode<synchronous>, transform_indices = @transform_5, window_bounds = array<i64: 1, 128>}, {transform_indices = @transform_6, window_bounds = array<i64: 1, 16, 128>}, {transform_indices = @transform_7, window_bounds = array<i64: 1, 2, 128>}]} {
    %c0 = arith.constant 0 : index
    %c0_0 = arith.constant 0 : index
    %c0_1 = arith.constant 0 : index
    %0 = vector.load %arg3[%c0, %c0_0, %c0_1] : memref<1x16x128xf32, #tpu.memory_space<vmem>>, vector<1x16x128xf32>
    %1 = vector.shape_cast %0 : vector<1x16x128xf32> to vector<16x128xf32>
    %c0_2 = arith.constant 0 : index
    %c7 = arith.constant 7 : index
    %c0_3 = arith.constant 0 : index
    %2 = vector.load %arg2[%c0_2, %c7, %c0_3] : memref<1x8x128xf32, #tpu.memory_space<vmem>>, vector<1x1x128xf32>
    %3 = vector.shape_cast %2 : vector<1x1x128xf32> to vector<1x128xf32>
    %c0_4 = arith.constant 0 : index
    %c0_5 = arith.constant 0 : index
    %c0_6 = arith.constant 0 : index
    %4 = vector.load %arg4[%c0_4, %c0_5, %c0_6] : memref<1x8x128xf32, #tpu.memory_space<vmem>>, vector<1x1x128xf32>
    %5 = vector.shape_cast %4 : vector<1x1x128xf32> to vector<1x128xf32>
    %c0_7 = arith.constant 0 : index
    %c0_8 = arith.constant 0 : index
    %6 = vector.load %arg5[%c0_7, %c0_8] : memref<2x128xf32, #tpu.memory_space<vmem>>, vector<1x128xf32>
    %c1 = arith.constant 1 : index
    %c0_9 = arith.constant 0 : index
    %7 = vector.load %arg5[%c1, %c0_9] : memref<2x128xf32, #tpu.memory_space<vmem>>, vector<1x128xf32>
    %8 = vector.broadcast %6 : vector<1x128xf32> to vector<16x128xf32>
    %9 = arith.mulf %1, %8 : vector<16x128xf32>
    %10 = vector.broadcast %7 : vector<1x128xf32> to vector<16x128xf32>
    %11 = arith.addf %9, %10 : vector<16x128xf32>
    %cst = arith.constant 5.000000e-01 : f32
    %12 = vector.broadcast %cst : f32 to vector<16x128xf32>
    %13 = arith.mulf %12, %11 : vector<16x128xf32>
    %cst_10 = arith.constant 0.707106769 : f32
    %14 = vector.broadcast %cst_10 : f32 to vector<16x128xf32>
    %15 = arith.mulf %11, %14 : vector<16x128xf32>
    %16 = math.absf %15 : vector<16x128xf32>
    %cst_11 = arith.constant 0.327591091 : f32
    %17 = vector.broadcast %cst_11 : f32 to vector<16x128xf32>
    %18 = arith.mulf %17, %16 : vector<16x128xf32>
    %cst_12 = arith.constant 1.000000e+00 : f32
    %19 = vector.broadcast %cst_12 : f32 to vector<16x128xf32>
    %20 = arith.addf %19, %18 : vector<16x128xf32>
    %21 = tpu.reciprocal %20 {approx = true} : vector<16x128xf32> -> vector<16x128xf32>
    %22 = arith.mulf %20, %21 : vector<16x128xf32>
    %cst_13 = arith.constant 2.000000e+00 : f32
    %23 = vector.broadcast %cst_13 : f32 to vector<16x128xf32>
    %24 = arith.subf %23, %22 : vector<16x128xf32>
    %25 = arith.mulf %21, %24 : vector<16x128xf32>
    %cst_14 = arith.constant 1.06140542 : f32
    %26 = vector.broadcast %cst_14 : f32 to vector<16x128xf32>
    %27 = arith.mulf %26, %25 : vector<16x128xf32>
    %cst_15 = arith.constant -1.45315206 : f32
    %28 = vector.broadcast %cst_15 : f32 to vector<16x128xf32>
    %29 = arith.addf %27, %28 : vector<16x128xf32>
    %30 = arith.mulf %29, %25 : vector<16x128xf32>
    %cst_16 = arith.constant 1.42141378 : f32
    %31 = vector.broadcast %cst_16 : f32 to vector<16x128xf32>
    %32 = arith.addf %30, %31 : vector<16x128xf32>
    %33 = arith.mulf %32, %25 : vector<16x128xf32>
    %cst_17 = arith.constant -0.284496725 : f32
    %34 = vector.broadcast %cst_17 : f32 to vector<16x128xf32>
    %35 = arith.addf %33, %34 : vector<16x128xf32>
    %36 = arith.mulf %35, %25 : vector<16x128xf32>
    %cst_18 = arith.constant 0.254829586 : f32
    %37 = vector.broadcast %cst_18 : f32 to vector<16x128xf32>
    %38 = arith.addf %36, %37 : vector<16x128xf32>
    %39 = arith.mulf %38, %25 : vector<16x128xf32>
    %cst_19 = arith.constant 0.000000e+00 : f32
    %40 = vector.broadcast %cst_19 : f32 to vector<16x128xf32>
    %41 = arith.subf %40, %16 : vector<16x128xf32>
    %42 = arith.mulf %41, %16 : vector<16x128xf32>
    %43 = math.exp %42 : vector<16x128xf32>
    %44 = arith.mulf %39, %43 : vector<16x128xf32>
    %cst_20 = arith.constant 1.000000e+00 : f32
    %45 = vector.broadcast %cst_20 : f32 to vector<16x128xf32>
    %46 = arith.subf %45, %44 : vector<16x128xf32>
    %cst_21 = arith.constant 0.000000e+00 : f32
    %47 = vector.broadcast %cst_21 : f32 to vector<16x128xf32>
    %48 = arith.cmpf oge, %15, %47 : vector<16x128xf32>
    %cst_22 = arith.constant 0.000000e+00 : f32
    %49 = vector.broadcast %cst_22 : f32 to vector<16x128xf32>
    %50 = arith.subf %49, %46 : vector<16x128xf32>
    %51 = arith.select %48, %46, %50 : vector<16x128xi1>, vector<16x128xf32>
    %cst_23 = arith.constant 1.000000e+00 : f32
    %52 = vector.broadcast %cst_23 : f32 to vector<16x128xf32>
    %53 = arith.addf %52, %51 : vector<16x128xf32>
    %54 = arith.mulf %13, %53 : vector<16x128xf32>
    %55 = arith.mulf %3, %6 : vector<1x128xf32>
    %56 = arith.addf %55, %7 : vector<1x128xf32>
    %cst_24 = arith.constant 5.000000e-01 : f32
    %57 = vector.broadcast %cst_24 : f32 to vector<1x128xf32>
    %58 = arith.mulf %57, %56 : vector<1x128xf32>
    %cst_25 = arith.constant 0.707106769 : f32
    %59 = vector.broadcast %cst_25 : f32 to vector<1x128xf32>
    %60 = arith.mulf %56, %59 : vector<1x128xf32>
    %61 = math.absf %60 : vector<1x128xf32>
    %cst_26 = arith.constant 0.327591091 : f32
    %62 = vector.broadcast %cst_26 : f32 to vector<1x128xf32>
    %63 = arith.mulf %62, %61 : vector<1x128xf32>
    %cst_27 = arith.constant 1.000000e+00 : f32
    %64 = vector.broadcast %cst_27 : f32 to vector<1x128xf32>
    %65 = arith.addf %64, %63 : vector<1x128xf32>
    %66 = tpu.reciprocal %65 {approx = true} : vector<1x128xf32> -> vector<1x128xf32>
    %67 = arith.mulf %65, %66 : vector<1x128xf32>
    %cst_28 = arith.constant 2.000000e+00 : f32
    %68 = vector.broadcast %cst_28 : f32 to vector<1x128xf32>
    %69 = arith.subf %68, %67 : vector<1x128xf32>
    %70 = arith.mulf %66, %69 : vector<1x128xf32>
    %cst_29 = arith.constant 1.06140542 : f32
    %71 = vector.broadcast %cst_29 : f32 to vector<1x128xf32>
    %72 = arith.mulf %71, %70 : vector<1x128xf32>
    %cst_30 = arith.constant -1.45315206 : f32
    %73 = vector.broadcast %cst_30 : f32 to vector<1x128xf32>
    %74 = arith.addf %72, %73 : vector<1x128xf32>
    %75 = arith.mulf %74, %70 : vector<1x128xf32>
    %cst_31 = arith.constant 1.42141378 : f32
    %76 = vector.broadcast %cst_31 : f32 to vector<1x128xf32>
    %77 = arith.addf %75, %76 : vector<1x128xf32>
    %78 = arith.mulf %77, %70 : vector<1x128xf32>
    %cst_32 = arith.constant -0.284496725 : f32
    %79 = vector.broadcast %cst_32 : f32 to vector<1x128xf32>
    %80 = arith.addf %78, %79 : vector<1x128xf32>
    %81 = arith.mulf %80, %70 : vector<1x128xf32>
    %cst_33 = arith.constant 0.254829586 : f32
    %82 = vector.broadcast %cst_33 : f32 to vector<1x128xf32>
    %83 = arith.addf %81, %82 : vector<1x128xf32>
    %84 = arith.mulf %83, %70 : vector<1x128xf32>
    %cst_34 = arith.constant 0.000000e+00 : f32
    %85 = vector.broadcast %cst_34 : f32 to vector<1x128xf32>
    %86 = arith.subf %85, %61 : vector<1x128xf32>
    %87 = arith.mulf %86, %61 : vector<1x128xf32>
    %88 = math.exp %87 : vector<1x128xf32>
    %89 = arith.mulf %84, %88 : vector<1x128xf32>
    %cst_35 = arith.constant 1.000000e+00 : f32
    %90 = vector.broadcast %cst_35 : f32 to vector<1x128xf32>
    %91 = arith.subf %90, %89 : vector<1x128xf32>
    %cst_36 = arith.constant 0.000000e+00 : f32
    %92 = vector.broadcast %cst_36 : f32 to vector<1x128xf32>
    %93 = arith.cmpf oge, %60, %92 : vector<1x128xf32>
    %cst_37 = arith.constant 0.000000e+00 : f32
    %94 = vector.broadcast %cst_37 : f32 to vector<1x128xf32>
    %95 = arith.subf %94, %91 : vector<1x128xf32>
    %96 = arith.select %93, %91, %95 : vector<1x128xi1>, vector<1x128xf32>
    %cst_38 = arith.constant 1.000000e+00 : f32
    %97 = vector.broadcast %cst_38 : f32 to vector<1x128xf32>
    %98 = arith.addf %97, %96 : vector<1x128xf32>
    %99 = arith.mulf %58, %98 : vector<1x128xf32>
    %100 = arith.mulf %5, %6 : vector<1x128xf32>
    %101 = arith.addf %100, %7 : vector<1x128xf32>
    %cst_39 = arith.constant 5.000000e-01 : f32
    %102 = vector.broadcast %cst_39 : f32 to vector<1x128xf32>
    %103 = arith.mulf %102, %101 : vector<1x128xf32>
    %cst_40 = arith.constant 0.707106769 : f32
    %104 = vector.broadcast %cst_40 : f32 to vector<1x128xf32>
    %105 = arith.mulf %101, %104 : vector<1x128xf32>
    %106 = math.absf %105 : vector<1x128xf32>
    %cst_41 = arith.constant 0.327591091 : f32
    %107 = vector.broadcast %cst_41 : f32 to vector<1x128xf32>
    %108 = arith.mulf %107, %106 : vector<1x128xf32>
    %cst_42 = arith.constant 1.000000e+00 : f32
    %109 = vector.broadcast %cst_42 : f32 to vector<1x128xf32>
    %110 = arith.addf %109, %108 : vector<1x128xf32>
    %111 = tpu.reciprocal %110 {approx = true} : vector<1x128xf32> -> vector<1x128xf32>
    %112 = arith.mulf %110, %111 : vector<1x128xf32>
    %cst_43 = arith.constant 2.000000e+00 : f32
    %113 = vector.broadcast %cst_43 : f32 to vector<1x128xf32>
    %114 = arith.subf %113, %112 : vector<1x128xf32>
    %115 = arith.mulf %111, %114 : vector<1x128xf32>
    %cst_44 = arith.constant 1.06140542 : f32
    %116 = vector.broadcast %cst_44 : f32 to vector<1x128xf32>
    %117 = arith.mulf %116, %115 : vector<1x128xf32>
    %cst_45 = arith.constant -1.45315206 : f32
    %118 = vector.broadcast %cst_45 : f32 to vector<1x128xf32>
    %119 = arith.addf %117, %118 : vector<1x128xf32>
    %120 = arith.mulf %119, %115 : vector<1x128xf32>
    %cst_46 = arith.constant 1.42141378 : f32
    %121 = vector.broadcast %cst_46 : f32 to vector<1x128xf32>
    %122 = arith.addf %120, %121 : vector<1x128xf32>
    %123 = arith.mulf %122, %115 : vector<1x128xf32>
    %cst_47 = arith.constant -0.284496725 : f32
    %124 = vector.broadcast %cst_47 : f32 to vector<1x128xf32>
    %125 = arith.addf %123, %124 : vector<1x128xf32>
    %126 = arith.mulf %125, %115 : vector<1x128xf32>
    %cst_48 = arith.constant 0.254829586 : f32
    %127 = vector.broadcast %cst_48 : f32 to vector<1x128xf32>
    %128 = arith.addf %126, %127 : vector<1x128xf32>
    %129 = arith.mulf %128, %115 : vector<1x128xf32>
    %cst_49 = arith.constant 0.000000e+00 : f32
    %130 = vector.broadcast %cst_49 : f32 to vector<1x128xf32>
    %131 = arith.subf %130, %106 : vector<1x128xf32>
    %132 = arith.mulf %131, %106 : vector<1x128xf32>
    %133 = math.exp %132 : vector<1x128xf32>
    %134 = arith.mulf %129, %133 : vector<1x128xf32>
    %cst_50 = arith.constant 1.000000e+00 : f32
    %135 = vector.broadcast %cst_50 : f32 to vector<1x128xf32>
    %136 = arith.subf %135, %134 : vector<1x128xf32>
    %cst_51 = arith.constant 0.000000e+00 : f32
    %137 = vector.broadcast %cst_51 : f32 to vector<1x128xf32>
    %138 = arith.cmpf oge, %105, %137 : vector<1x128xf32>
    %cst_52 = arith.constant 0.000000e+00 : f32
    %139 = vector.broadcast %cst_52 : f32 to vector<1x128xf32>
    %140 = arith.subf %139, %136 : vector<1x128xf32>
    %141 = arith.select %138, %136, %140 : vector<1x128xi1>, vector<1x128xf32>
    %cst_53 = arith.constant 1.000000e+00 : f32
    %142 = vector.broadcast %cst_53 : f32 to vector<1x128xf32>
    %143 = arith.addf %142, %141 : vector<1x128xf32>
    %144 = arith.mulf %103, %143 : vector<1x128xf32>
    %c0_i32 = arith.constant 0 : i32
    %145 = arith.cmpi sgt, %arg1, %c0_i32 : i32
    %cst_54 = arith.constant 0.000000e+00 : f32
    %146 = vector.broadcast %cst_54 : f32 to vector<1x128xf32>
    %147 = arith.select %145, %99, %146 : vector<1x128xf32>
    %c0_i32_55 = arith.constant 0 : i32
    %148 = arith.cmpi slt, %arg1, %c0_i32_55 : i32
    %cst_56 = arith.constant 0.000000e+00 : f32
    %149 = vector.broadcast %cst_56 : f32 to vector<1x128xf32>
    %150 = arith.select %148, %144, %149 : vector<1x128xf32>
    %151 = vector.extract_strided_slice %54 {offsets = [0, 0], sizes = [15, 128], strides = [1, 1]} : vector<16x128xf32> to vector<15x128xf32>
    %152 = tpu.concatenate %147, %151 in 0 : vector<1x128xf32>, vector<15x128xf32> -> vector<16x128xf32>
    %153 = vector.extract_strided_slice %54 {offsets = [1, 0], sizes = [15, 128], strides = [1, 1]} : vector<16x128xf32> to vector<15x128xf32>
    %154 = tpu.concatenate %153, %150 in 0 : vector<15x128xf32>, vector<1x128xf32> -> vector<16x128xf32>
    %c0_57 = arith.constant 0 : index
    %c0_58 = arith.constant 0 : index
    %155 = vector.load %arg6[%c0_57, %c0_58] : memref<384x128xf32, #tpu.memory_space<vmem>>, vector<128x128xf32>
    %cst_59 = arith.constant dense<0.000000e+00> : vector<16x128xf32>
    %156 = tpu.matmul %152, %155, %cst_59 {dimension_numbers = #tpu.dot_dimension_numbers<[1], [0], [0], [1], [0, 0, 1, 1], [], []>} : vector<16x128xf32>, vector<128x128xf32>, vector<16x128xf32> -> vector<16x128xf32>
    %c128 = arith.constant 128 : index
    %c0_60 = arith.constant 0 : index
    %157 = vector.load %arg6[%c128, %c0_60] : memref<384x128xf32, #tpu.memory_space<vmem>>, vector<128x128xf32>
    %cst_61 = arith.constant dense<0.000000e+00> : vector<16x128xf32>
    %158 = tpu.matmul %54, %157, %cst_61 {dimension_numbers = #tpu.dot_dimension_numbers<[1], [0], [0], [1], [0, 0, 1, 1], [], []>} : vector<16x128xf32>, vector<128x128xf32>, vector<16x128xf32> -> vector<16x128xf32>
    %159 = arith.addf %156, %158 : vector<16x128xf32>
    %c256 = arith.constant 256 : index
    %c0_62 = arith.constant 0 : index
    %160 = vector.load %arg6[%c256, %c0_62] : memref<384x128xf32, #tpu.memory_space<vmem>>, vector<128x128xf32>
    %cst_63 = arith.constant dense<0.000000e+00> : vector<16x128xf32>
    %161 = tpu.matmul %154, %160, %cst_63 {dimension_numbers = #tpu.dot_dimension_numbers<[1], [0], [0], [1], [0, 0, 1, 1], [], []>} : vector<16x128xf32>, vector<128x128xf32>, vector<16x128xf32> -> vector<16x128xf32>
    %162 = arith.addf %159, %161 : vector<16x128xf32>
    %c0_64 = arith.constant 0 : index
    %c0_65 = arith.constant 0 : index
    %163 = vector.load %arg7[%c0_64, %c0_65] : memref<1x128xf32, #tpu.memory_space<vmem>>, vector<1x128xf32>
    %164 = vector.broadcast %163 : vector<1x128xf32> to vector<16x128xf32>
    %165 = arith.addf %162, %164 : vector<16x128xf32>
    %c0_66 = arith.constant 0 : index
    %c0_67 = arith.constant 0 : index
    %c0_68 = arith.constant 0 : index
    %166 = vector.load %arg8[%c0_66, %c0_67, %c0_68] : memref<1x16x128xf32, #tpu.memory_space<vmem>>, vector<1x16x128xf32>
    %167 = vector.shape_cast %166 : vector<1x16x128xf32> to vector<16x128xf32>
    %168 = vector.shape_cast %165 : vector<16x128xf32> to vector<1x16x128xf32>
    tpu.vector_store %arg8[%c0_66, %c0_67, %c0_68], %168 {strides = array<i32>} : memref<1x16x128xf32, #tpu.memory_space<vmem>>, vector<1x16x128xf32>,
    %cst_69 = arith.constant dense<0.000000e+00> : vector<128xf32>
    %169 = vector.multi_reduction <add>, %165, %cst_69 [0] : vector<16x128xf32> to vector<128xf32>
    %170 = vector.shape_cast %169 : vector<128xf32> to vector<1x128xf32>
    %171 = arith.mulf %165, %165 : vector<16x128xf32>
    %cst_70 = arith.constant dense<0.000000e+00> : vector<128xf32>
    %172 = vector.multi_reduction <add>, %171, %cst_70 [0] : vector<16x128xf32> to vector<128xf32>
    %173 = vector.shape_cast %172 : vector<128xf32> to vector<1x128xf32>
    %174 = tpu.concatenate %170, %173 in 0 : vector<1x128xf32>, vector<1x128xf32> -> vector<2x128xf32>
    %c0_71 = arith.constant 0 : index
    %c0_72 = arith.constant 0 : index
    %c0_73 = arith.constant 0 : index
    %175 = vector.load %arg9[%c0_71, %c0_72, %c0_73] : memref<1x2x128xf32, #tpu.memory_space<vmem>>, vector<1x2x128xf32>
    %176 = vector.shape_cast %175 : vector<1x2x128xf32> to vector<2x128xf32>
    %177 = vector.shape_cast %174 : vector<2x128xf32> to vector<1x2x128xf32>
    tpu.vector_store %arg9[%c0_71, %c0_72, %c0_73], %177 {strides = array<i32>} : memref<1x2x128xf32, #tpu.memory_space<vmem>>, vector<1x2x128xf32>,
    return
  }
  func.func @transform_0(%arg0: i32, %arg1: i32) -> (i32, i32, i32) {
    %c2_i32 = arith.constant 2 : i32
    %0 = arith.muli %arg1, %c2_i32 : i32
    %c1_i32 = arith.constant 1 : i32
    %1 = arith.subi %0, %c1_i32 : i32
    %c0_i32 = arith.constant 0 : i32
    %2 = arith.maxsi %1, %c0_i32 : i32
    %c0_i32_0 = arith.constant 0 : i32
    %c0_i32_1 = arith.constant 0 : i32
    return %arg0, %2, %c0_i32_0 : i32, i32, i32
  }
  func.func @transform_1(%arg0: i32, %arg1: i32) -> (i32, i32, i32) {
    %c0_i32 = arith.constant 0 : i32
    %c0_i32_0 = arith.constant 0 : i32
    return %arg0, %arg1, %c0_i32 : i32, i32, i32
  }
  func.func @transform_2(%arg0: i32, %arg1: i32) -> (i32, i32, i32) {
    %c1_i32 = arith.constant 1 : i32
    %0 = arith.addi %arg1, %c1_i32 : i32
    %c2_i32 = arith.constant 2 : i32
    %1 = arith.muli %0, %c2_i32 : i32
    %c1_i32_0 = arith.constant 1 : i32
    %2 = arith.minsi %1, %c1_i32_0 : i32
    %c0_i32 = arith.constant 0 : i32
    %c0_i32_1 = arith.constant 0 : i32
    return %arg0, %2, %c0_i32 : i32, i32, i32
  }
  func.func @transform_3(%arg0: i32, %arg1: i32) -> (i32, i32) {
    %c0_i32 = arith.constant 0 : i32
    %c0_i32_0 = arith.constant 0 : i32
    %c0_i32_1 = arith.constant 0 : i32
    return %c0_i32, %c0_i32_0 : i32, i32
  }
  func.func @transform_4(%arg0: i32, %arg1: i32) -> (i32, i32) {
    %c0_i32 = arith.constant 0 : i32
    %c0_i32_0 = arith.constant 0 : i32
    %c0_i32_1 = arith.constant 0 : i32
    return %c0_i32, %c0_i32_0 : i32, i32
  }
  func.func @transform_5(%arg0: i32, %arg1: i32) -> (i32, i32) {
    %c0_i32 = arith.constant 0 : i32
    %c0_i32_0 = arith.constant 0 : i32
    %c0_i32_1 = arith.constant 0 : i32
    return %c0_i32, %c0_i32_0 : i32, i32
  }
  func.func @transform_6(%arg0: i32, %arg1: i32) -> (i32, i32, i32) {
    %c0_i32 = arith.constant 0 : i32
    %c0_i32_0 = arith.constant 0 : i32
    return %arg0, %arg1, %c0_i32 : i32, i32, i32
  }
  func.func @transform_7(%arg0: i32, %arg1: i32) -> (i32, i32, i32) {
    %c1_i32 = arith.constant 1 : i32
    %0 = arith.muli %arg0, %c1_i32 : i32
    %1 = arith.addi %0, %arg1 : i32
    %c0_i32 = arith.constant 0 : i32
    %c0_i32_0 = arith.constant 0 : i32
    %c0_i32_1 = arith.constant 0 : i32
    return %1, %c0_i32, %c0_i32_0 : i32, i32, i32
  }
}

</mosaic_0001>

<bundles_post_ra>
// kernel: unet_down.4
= control target key start
LH: loop header
LB: loop body
LE: loop exit
PB: predicated region body
PF: predicated region fallthrough
CT: control target
= control target key end

     0   :  { %s1055_s23 = smov 0   ;;  %s1057_s24 = smov 0   ;;  %s1277_s0 = inlined_call_operand.vmem [shape: f32[2,16,128], index: 0, kind: input, shape index: {}, may-alias: {0,1,2}]   ;;  %s1278_s1 = inlined_call_operand.vmem [shape: f32[2,16,128], index: 1, kind: input, shape index: {}, may-alias: {0,1,2}]   ;;  %s1279_s2 = inlined_call_operand.vmem [shape: f32[2,16,128], index: 2, kind: input, shape index: {}, may-alias: {0,1,2}]   ;;  %s1280_s3 = inlined_call_operand.vmem [shape: f32[2,128], index: 3, kind: input, shape index: {}]   ;;  %s1281_s4 = inlined_call_operand.vmem [shape: f32[384,128], index: 4, kind: input, shape index: {}]   ;;  %s1282_s5 = inlined_call_operand.vmem [shape: f32[1,128], index: 5, kind: input, shape index: {}]   ;;  %s1283_s6 = inlined_call_operand.vmem [shape: f32[2,16,128], index: 6, kind: output, shape index: {0}]   ;;  %s1284_s7 = inlined_call_operand.vmem [shape: f32[2,2,128], index: 7, kind: output, shape index: {1}]  }
   0x1   :  { %s1059_s2 = smov 0  }
   0x2 LB: > { %s30_s25 = sadd.s32 1, %s1008_s24  ;;  %p919_p0 = scmp.ge.s32.totalorder %s1012_s2, 1  ;;  %s1012_s2 = sphi %s1059_s2, %s18_s2   ;;  %s1008_s24 = sphi %s1057_s24, %s1286_s24   ;;  %s1004_s23 = sphi %s1055_s23, %s1285_s23  }
   0x3   : > { %p32_p1 = scmp.ge.s32.totalorder %s30_s25, 2  ;;  %p325_p2 = scmp.lt.s32.totalorder %s1012_s2, 3 }
   0x5   : > { %s1288_s25 = smov (%p32_p1, %s30_s25), 0  ;;  %p326_p3 = pnand %p919_p0, %p325_p2 }
   0x6   : > { %p411_p4 = scmp.lt.s32.totalorder (!%p326_p3), %s1004_s23, 1 }
   0x7   : > { %329 = sbr.rel (%p326_p3) target bundleno = 243 (0xf3), region = 44 }
   0xc   : > { %v706_v0 = vld [vmem:[%s1281_s4 + $0x178] sm:$0xff]  ;;  %v705_v1 = vld [vmem:[%s1281_s4 + $0x170] sm:$0xff]  ;;  %v704_v5 = vld [vmem:[%s1281_s4 + $0x168] sm:$0xff]  ;;  %s1290_s23 = smov (!%p411_p4, %s1004_s23), 1  ;;  %vm596_vm2 = vcmask 1040384   ;;  %vm603_vm4 = vcmask 1046528  }
   0xd   : > { %v644_v2 = vld [vmem:[%s1281_s4 + $0xf8] sm:$0xff]  ;;  %707 = vmatpush.msra.mxu2 %v706_v0  ;;  %v643_v4 = vld [vmem:[%s1281_s4 + $0xf0] sm:$0xff]  ;;  %v642_v7 = vld [vmem:[%s1281_s4 + $0xe8] sm:$0xff]  ;;  %s934_s16 = sshll.u32 %s1290_s23, 4 }
   0xe   : > { %645 = vmatpush.msra.mxu0 %v644_v2  ;;  %v628_v3 = vld [vmem:[%s1281_s4 + $0x78] sm:$0xff]  ;;  %938 = vmatpush.msra.mxu3 %v644_v2  ;;  %v627_v6 = vld [vmem:[%s1281_s4 + $0x70] sm:$0xff]  ;;  %v626_v8 = vld [vmem:[%s1281_s4 + $0x68] sm:$0xff]  ;;  %s418_s29 = scalar_lea.vmem %s1278_s1, %s934_s16  ;;  %s444_s10 = scalar_lea.vmem %s1283_s6, %s934_s16 }
   0xf   : > { %668 = vmatpush.msra.mxu1 %v628_v3  ;;  %708 = vmatpush.msra.mxu2 %v705_v1  ;;  %v703_v9 = vld [vmem:[%s1281_s4 + $0x160] sm:$0xff]  ;;  %v702_v12 = vld [vmem:[%s1281_s4 + $0x158] sm:$0xff]  ;;  %v701_v15 = vld [vmem:[%s1281_s4 + $0x150] sm:$0xff]  ;;  %s928_s16 = sshll.u32 %s1290_s23, 1 }
  0x10   : > { %646 = vmatpush.msra.mxu0 %v643_v4  ;;  %939 = vmatpush.msra.mxu3 %v643_v4  ;;  %v641_v10 = vld [vmem:[%s1281_s4 + $0xe0] sm:$0xff]  ;;  %v640_v13 = vld [vmem:[%s1281_s4 + $0xd8] sm:$0xff]  ;;  %v639_v16 = vld [vmem:[%s1281_s4 + $0xd0] sm:$0xff]  ;;  %s450_s12 = scalar_lea.vmem %s1284_s7, %s928_s16 }
  0x11   : > { %669 = vmatpush.msra.mxu1 %v627_v6  ;;  %709 = vmatpush.msra.mxu2 %v704_v5  ;;  %v625_v11 = vld [vmem:[%s1281_s4 + $0x60] sm:$0xff]  ;;  %v624_v14 = vld [vmem:[%s1281_s4 + $0x58] sm:$0xff]  ;;  %v623_v17 = vld [vmem:[%s1281_s4 + $0x50] sm:$0xff] }
  0x12   : > { %647 = vmatpush.msra.mxu0 %v642_v7  ;;  %940 = vmatpush.msra.mxu3 %v642_v7  ;;  %v700_v18 = vld [vmem:[%s1281_s4 + $0x148] sm:$0xff]  ;;  %v699_v21 = vld [vmem:[%s1281_s4 + $0x140] sm:$0xff]  ;;  %v698_v23 = vld [vmem:[%s1281_s4 + $0x138] sm:$0xff] }
  0x13   : > { %670 = vmatpush.msra.mxu1 %v626_v8  ;;  %710 = vmatpush.msra.mxu2 %v703_v9  ;;  %v638_v19 = vld [vmem:[%s1281_s4 + $0xc8] sm:$0xff]  ;;  %v637_v22 = vld [vmem:[%s1281_s4 + $0xc0] sm:$0xff]  ;;  %v636_v25 = vld [vmem:[%s1281_s4 + $0xb8] sm:$0xff] }
  0x14   : > { %648 = vmatpush.msra.mxu0 %v641_v10  ;;  %941 = vmatpush.msra.mxu3 %v641_v10  ;;  %v622_v20 = vld [vmem:[%s1281_s4 + $0x48] sm:$0xff]  ;;  %v621_v24 = vld [vmem:[%s1281_s4 + $0x40] sm:$0xff]  ;;  %v697_v26 = vld [vmem:[%s1281_s4 + $0x130] sm:$0xff] }
  0x15   : > { %671 = vmatpush.msra.mxu1 %v625_v11  ;;  %711 = vmatpush.msra.mxu2 %v702_v12  ;;  %v620_v27 = vld [vmem:[%s1281_s4 + $0x38] sm:$0xff]  ;;  %v635_v28 = vld [vmem:[%s1281_s4 + $0xb0] sm:$0xff]  ;;  %v452_v29 = vld [vmem:[%s418_s29] sm:$0xff] }
  0x16   : > { %649 = vmatpush.msra.mxu0 %v640_v13  ;;  %942 = vmatpush.msra.mxu3 %v640_v13  ;;  %v453_v30 = vld [vmem:[%s418_s29 + $0x8] sm:$0xff]  ;;  %v979_v31 = vld [vmem:[%s1280_s3] ss:$0 sm:$0xff]  ;;  %v980_v32 = vld [vmem:[%s1280_s3 + $0x1] ss:$0 sm:$0xff] }
  0x17   : > { %672 = vmatpush.msra.mxu1 %v624_v14  ;;  %712 = vmatpush.msra.mxu2 %v701_v15  ;;  %v619_v33 = vld [vmem:[%s1281_s4 + $0x30] sm:$0xff]  ;;  %v696_v34 = vld [vmem:[%s1281_s4 + $0x128] sm:$0xff]  ;;  %v459_v36 = vmul.f32 %v979_v31, %v452_v29  ;;  %v460_v37 = vmul.f32 %v979_v31, %v453_v30  ;;  %v695_v39 = vld [vmem:[%s1281_s4 + $0x120] sm:$0xff] }
  0x18   : > { %650 = vmatpush.msra.mxu0 %v639_v16  ;;  %943 = vmatpush.msra.mxu3 %v639_v16  ;;  %v634_v35 = vld [vmem:[%s1281_s4 + $0xa8] sm:$0xff]  ;;  %v633_v40 = vld [vmem:[%s1281_s4 + $0xa0] sm:$0xff]  ;;  %v694_v44 = vld [vmem:[%s1281_s4 + $0x118] sm:$0xff] }
  0x19   : > { %673 = vmatpush.msra.mxu1 %v623_v17  ;;  %713 = vmatpush.msra.mxu2 %v700_v18  ;;  %v618_v38 = vld [vmem:[%s1281_s4 + $0x28] sm:$0xff]  ;;  %v1198_v41 = vadd.f32 %v980_v32, %v459_v36  ;;  %v1200_v42 = vadd.f32 %v980_v32, %v460_v37  ;;  %v617_v43 = vld [vmem:[%s1281_s4 + $0x20] sm:$0xff]  ;;  %v632_v45 = vld [vmem:[%s1281_s4 + $0x98] sm:$0xff] }
  0x1a   : > { %651 = vmatpush.msra.mxu0 %v638_v19  ;;  %944 = vmatpush.msra.mxu3 %v638_v19  ;;  %v616_v48 = vld [vmem:[%s1281_s4 + $0x18] sm:$0xff]  ;;  %v693_v49 = vld [vmem:[%s1281_s4 + $0x110] sm:$0xff]  ;;  %v692_v54 = vld [vmem:[%s1281_s4 + $0x108] sm:$0xff] }
  0x1b   : > { %674 = vmatpush.msra.mxu1 %v622_v20  ;;  %714 = vmatpush.msra.mxu2 %v699_v21  ;;  %v1212_v46 = vmul.f32 0.70710677, %v1198_v41  ;;  %v1215_v47 = vmul.f32 0.70710677, %v1200_v42  ;;  %v631_v50 = vld [vmem:[%s1281_s4 + $0x90] sm:$0xff]  ;;  %v691_v57 = vld [vmem:[%s1281_s4 + $0x100] sm:$0xff]  ;;  %vm929_vm3 = vmneg %vm596_vm2 }
  0x1c   : > { %652 = vmatpush.msra.mxu0 %v637_v22  ;;  %945 = vmatpush.msra.mxu3 %v637_v22  ;;  %v615_v53 = vld [vmem:[%s1281_s4 + $0x10] sm:$0xff]  ;;  %v630_v9 = vld [vmem:[%s1281_s4 + $0x88] sm:$0xff]  ;;  %v629_v11 = vld [vmem:[%s1281_s4 + $0x80] sm:$0xff] }
  0x1d   : > { %675 = vmatpush.msra.mxu1 %v621_v24  ;;  %715 = vmatpush.msra.mxu2 %v698_v23  ;;  %v468_v51 = vand.u32 2147483647, %v1212_v46  ;;  %v469_v52 = vand.u32 2147483647, %v1215_v47  ;;  %v614_v10 = vld [vmem:[%s1281_s4 + $0x8] sm:$0xff]  ;;  %v613_v14 = vld [vmem:[%s1281_s4] sm:$0xff] }
  0x1e   : > { %653 = vmatpush.msra.mxu0 %v636_v25  ;;  %946 = vmatpush.msra.mxu3 %v636_v25  ;;  %vm512_vm0 = vcmp.ge.f32.partialorder %v1212_v46, 0.0  ;;  %vm513_vm1 = vcmp.ge.f32.partialorder %v1215_v47, 0.0 }
  0x1f   : > { %676 = vmatpush.msra.mxu1 %v620_v27  ;;  %716 = vmatpush.msra.mxu2 %v697_v26  ;;  %v470_v55 = vmul.f32 0.3275911, %v468_v51  ;;  %v471_v56 = vmul.f32 0.3275911, %v469_v52  ;;  %v500_v2 = vsub.f32 0.0, %v468_v51  ;;  %v501_v4 = vsub.f32 0.0, %v469_v52 }
  0x20   : > { %654 = vmatpush.msra.mxu0 %v635_v28  ;;  %947 = vmatpush.msra.mxu3 %v635_v28 }
  0x21   : > { %677 = vmatpush.msra.mxu1 %v619_v33  ;;  %717 = vmatpush.msra.mxu2 %v696_v34  ;;  %v472_v58 = vadd.f32 1.0, %v470_v55  ;;  %v473_v59 = vadd.f32 1.0, %v471_v56  ;;  %v502_v8 = vmul.f32 %v500_v2, %v468_v51  ;;  %v503_v13 = vmul.f32 %v501_v4, %v469_v52 }
  0x22   : > { %655 = vmatpush.msra.mxu0 %v634_v35  ;;  %948 = vmatpush.msra.mxu3 %v634_v35 }
  0x23   : > { %678 = vmatpush.msra.mxu1 %v618_v38  ;;  %718 = vmatpush.msra.mxu2 %v695_v39  ;;  %982 = vrcp.f32 %v472_v58  ;;  %v504_v18 = vmul.f32 1.442695, %v502_v8  ;;  %v506_v20 = vmul.f32 1.442695, %v503_v13  ;;  %v464_v39 = vmul.f32 0.5, %v1198_v41 }
  0x24   : > { %656 = vmatpush.msra.mxu0 %v633_v40  ;;  %949 = vmatpush.msra.mxu3 %v633_v40  ;;  %984 = vrcp.f32 %v473_v59 }
  0x25   : > { %679 = vmatpush.msra.mxu1 %v617_v43  ;;  %719 = vmatpush.msra.mxu2 %v694_v44  ;;  %986 = vpow2.f32 %v504_v18  ;;  %v465_v43 = vmul.f32 0.5, %v1200_v42  ;;  %v1014_v42 = vmov 0.0  }
  0x26   : > { %657 = vmatpush.msra.mxu0 %v632_v45  ;;  %950 = vmatpush.msra.mxu3 %v632_v45  ;;  %988 = vpow2.f32 %v506_v20 }
  0x27   : > { %680 = vmatpush.msra.mxu1 %v616_v48  ;;  %720 = vmatpush.msra.mxu2 %v693_v49 }
  0x28   : > { %658 = vmatpush.msra.mxu0 %v631_v50  ;;  %951 = vmatpush.msra.mxu3 %v631_v50 }
  0x29   : > { %681 = vmatpush.msra.mxu1 %v615_v53  ;;  %721 = vmatpush.msra.mxu2 %v692_v54  ;;  %v983_v60 = vpop.eup %982  ;;  %v610_v54 = vrot.slane %v1014_v42, 1 }
  0x2a   : > { %v985_v61 = vpop.eup %984  ;;  %v476_v62 = vmul.f32 %v983_v60, %v472_v58  ;;  %659 = vmatpush.msra.mxu0 %v630_v9  ;;  %952 = vmatpush.msra.mxu3 %v630_v9 }
  0x2b   : > { %722 = vmatpush.msra.mxu2 %v691_v57  ;;  %v477_v63 = vmul.f32 %v985_v61, %v473_v59  ;;  %682 = vmatpush.msra.mxu1 %v614_v10  ;;  %v987_v29 = vpop.eup %986 }
  0x2c   : > { %v478_v0 = vsub.f32 2.0, %v476_v62  ;;  %660 = vmatpush.msra.mxu0 %v629_v11  ;;  %953 = vmatpush.msra.mxu3 %v629_v11  ;;  %v989_v31 = vpop.eup %988 }
  0x2d   : > { %v479_v1 = vsub.f32 2.0, %v477_v63  ;;  %683 = vmatpush.msra.mxu1 %v613_v14 }
  0x2e   : > { %v480_v3 = vmul.f32 %v983_v60, %v478_v0  ;;  %v981_v60 = vld [vmem:[%s1282_s5] ss:$0 sm:$0xff] }
  0x2f   : > { %v481_v5 = vmul.f32 %v985_v61, %v479_v1 }
  0x30   : > { %v482_v6 = vmul.f32 1.0614054, %v480_v3 }
  0x31   : > { %v483_v7 = vmul.f32 1.0614054, %v481_v5 }
  0x32   : > { %v484_v12 = vadd.f32 -1.4531521, %v482_v6 }
  0x33   : > { %v485_v15 = vadd.f32 -1.4531521, %v483_v7 }
  0x34   : > { %v486_v16 = vmul.f32 %v484_v12, %v480_v3 }
  0x35   : > { %v487_v17 = vmul.f32 %v485_v15, %v481_v5 }
  0x36   : > { %v488_v19 = vadd.f32 1.4214138, %v486_v16 }
  0x37   : > { %v489_v21 = vadd.f32 1.4214138, %v487_v17 }
  0x38   : > { %v490_v22 = vmul.f32 %v488_v19, %v480_v3 }
  0x39   : > { %v491_v23 = vmul.f32 %v489_v21, %v481_v5 }
  0x3a   : > { %v492_v24 = vadd.f32 -0.28449672, %v490_v22 }
  0x3b   : > { %v493_v25 = vadd.f32 -0.28449672, %v491_v23 }
  0x3c   : > { %v494_v26 = vmul.f32 %v492_v24, %v480_v3 }
  0x3d   : > { %v495_v27 = vmul.f32 %v493_v25, %v481_v5 }
  0x3e   : > { %v496_v28 = vadd.f32 0.2548296, %v494_v26 }
  0x3f   : > { %v497_v30 = vadd.f32 0.2548296, %v495_v27 }
  0x40   : > { %v498_v32 = vmul.f32 %v496_v28, %v480_v3 }
  0x41   : > { %v499_v33 = vmul.f32 %v497_v30, %v481_v5 }
  0x42   : > { %v508_v34 = vmul.f32 %v987_v29, %v498_v32 }
  0x43   : > { %v509_v35 = vmul.f32 %v989_v31, %v499_v33 }
  0x44   : > { %v510_v36 = vsub.f32 1.0, %v508_v34 }
  0x45   : > { %v511_v37 = vsub.f32 1.0, %v509_v35 }
  0x46   : > { %v514_v38 = vsub.f32 0.0, %v510_v36 }
  0x47   : > { %v515_v40 = vsub.f32 0.0, %v511_v37 }
  0x48   : > { %v516_v44 = vsel %vm512_vm0, %v510_v36, %v514_v38 }
  0x49   : > { %v517_v45 = vsel %vm513_vm1, %v511_v37, %v515_v40  ;;  %v518_v48 = vadd.f32 1.0, %v516_v44 }
  0x4a   : > { %v519_v49 = vadd.f32 1.0, %v517_v45 }
  0x4b   : > { %v520_v50 = vmul.f32 %v518_v48, %v464_v39 }
  0x4c   : > { %v521_v51 = vmul.f32 %v519_v49, %v465_v43 }
  0x4d   : > { %v604_v52 = vrot.slane %v520_v50, 1  ;;  %661 = vmatmul.f32.vlgmr.msra.gmra.mxu0 %v520_v50  ;;  %v597_v46 = vrot.slane %v520_v50, 7 }
  0x4e   : > { %v605_v47 = vrot.slane %v521_v51, 1  ;;  %664 = vmatmul.f32.vlgmr.msra.gmra.mxu3 %v521_v51  ;;  %v598_v53 = vrot.slane %v521_v51, 7 }
  0x4f   : > { %930 = vmatmul.msk.f32.vlgmr.msra.gmra.mxu1 %vm929_vm3, %v597_v46 }
  0x50   : > { %v606_v41 = vsel %vm603_vm4, %v604_v52, %v605_v47  ;;  %v599_v55 = vsel %vm596_vm2, %v597_v46, %v598_v53  ;;  %v612_v56 = vsel %vm603_vm4, %v605_v47, %v610_v54 }
  0x51   : > { %723 = vmatmul.f32.vlgmr.msra.gmra.mxu2 %v606_v41 }
  0x57   : > { %687 = vmatmul.f32.gmra.mxu1 %v599_v55 }
  0x59   : > { %726 = vmatmul.f32.gmra.mxu2 %v612_v56 }
  0xca   : > { %v662_v58 = vpop.f32.mrf.mxu0 }
  0xcc   : > { %v685_v57 = vpop.f32.mrf.mxu1 }
  0xcd   : > { %v686_v59 = vadd.f32 %v685_v57, %v662_v58 }
  0xd1   : > { %v665_v63 = vpop.f32.mrf.mxu3 }
  0xd4   : > { %v724_v61 = vpop.f32.mrf.mxu2  ;;  %v688_v0 = vpop.f32.mrf.mxu1 }
  0xd5   : > { %v730_v62 = vadd.f32 %v724_v61, %v686_v59  ;;  %v689_v2 = vadd.f32 %v688_v0, %v665_v63 }
  0xd7   : > { %v736_v1 = vadd.f32 %v981_v60, %v730_v62 }
  0xd9   : > { %738 = vst [vmem:[%s444_s10] sm:$0xff] %v736_v1  ;;  %v747_v6 = vmul.f32 %v736_v1, %v736_v1 }
  0xdc   : > { %v727_v3 = vpop.f32.mrf.mxu2 }
  0xdd   : > { %v731_v4 = vadd.f32 %v727_v3, %v689_v2 }
  0xdf   : > { %v737_v5 = vadd.f32 %v981_v60, %v731_v4 }
  0xe1   : > { %739 = vst [vmem:[%s444_s10 + $0x8] sm:$0xff] %v737_v5  ;;  %v740_v7 = vadd.f32 %v737_v5, %v736_v1  ;;  %v748_v8 = vmul.f32 %v737_v5, %v737_v5 }
  0xe3   : > { %v741_v9 = vrot.slane %v740_v7, 4  ;;  %v749_v10 = vadd.f32 %v748_v8, %v747_v6 }
  0xe5   : > { %v742_v11 = vadd.f32 %v741_v9, %v740_v7  ;;  %v750_v12 = vrot.slane %v749_v10, 4 }
  0xe7   : > { %v743_v13 = vrot.slane %v742_v11, 2  ;;  %v751_v14 = vadd.f32 %v750_v12, %v749_v10 }
  0xe9   : > { %v744_v15 = vadd.f32 %v743_v13, %v742_v11  ;;  %v752_v16 = vrot.slane %v751_v14, 2 }
  0xeb   : > { %v745_v17 = vrot.slane %v744_v15, 1  ;;  %v753_v18 = vadd.f32 %v752_v16, %v751_v14 }
  0xed   : > { %v754_v19 = vrot.slane %v753_v18, 1  ;;  %v746_v20 = vadd.f32 %v745_v17, %v744_v15 }
  0xef   : > { %v755_v21 = vadd.f32 %v754_v19, %v753_v18 }
  0xf1   : > { %v756_v22 = vsel %vm596_vm2, %v746_v20, %v755_v21 }
  0xf2   : > { %757 = vst [vmem:[%s450_s12] sm:$0x3] %v756_v22 }
  0xf3 PF: > { %s18_s2 = sadd.s32 1, %s1012_s2   ;;  %s1285_s23 = smov %s1008_s24 }
  0xf4   : > { %p15_p5 = scmp.ge.s32.totalorder %s18_s2, 4   ;;  %s1286_s24 = smov %s1288_s25 }
  0xf6   :  { %17 = sbr.rel (!%p15_p5) target bundleno = 2 (0x2), region = 92 }

// kernel: unet_down.5
= control target key start
LH: loop header
LB: loop body
LE: loop exit
PB: predicated region body
PF: predicated region fallthrough
CT: control target
= control target key end

     0   :  { %s411_s9 = smov 0   ;;  %s413_s10 = smov 0   ;;  %s454_s0 = inlined_call_operand.vmem [shape: f32[2,16,128], index: 0, kind: input, shape index: {}]   ;;  %s455_s1 = inlined_call_operand.vmem [shape: f32[2,128], index: 1, kind: input, shape index: {}]   ;;  %s456_s2 = inlined_call_operand.vmem [shape: f32[2,8,128], index: 2, kind: output, shape index: {}]  }
   0x1   :  { %s415_s11 = smov 0  }
   0x2 LB: > { %s24_s12 = sadd.s32 1, %s390_s10  ;;  %p330_p0 = scmp.ge.s32.totalorder %s394_s11, 1  ;;  %s394_s11 = sphi %s415_s11, %s12_s11   ;;  %s390_s10 = sphi %s413_s10, %s458_s10   ;;  %s386_s9 = sphi %s411_s9, %s457_s9  }
   0x3   : > { %p26_p1 = scmp.ge.s32.totalorder %s24_s12, 2  ;;  %p133_p2 = scmp.lt.s32.totalorder %s394_s11, 3 }
   0x5   : > { %s460_s12 = smov (%p26_p1, %s24_s12), 0  ;;  %p134_p3 = pnand %p330_p0, %p133_p2 }
   0x6   : > { %p162_p4 = scmp.lt.s32.totalorder (!%p134_p3), %s386_s9, 1 }
   0x7   : > { %137 = sbr.rel (%p134_p3) target bundleno = 74 (0x4a), region = 28 }
   0xc   : > { %s462_s9 = smov (!%p162_p4, %s386_s9), 1  ;;  %v362_v0 = vld [vmem:[%s455_s1] ss:$0 sm:$0xff]  ;;  %v363_v1 = vld [vmem:[%s455_s1 + $0x1] ss:$0 sm:$0xff] }
   0xd   : > { %s337_s15 = sshll.u32 %s462_s9, 4  ;;  %s333_s21 = sshll.u32 %s462_s9, 3 }
   0xe   : > { %s169_s18 = scalar_lea.vmem %s454_s0, %s337_s15  ;;  %s177_s24 = scalar_lea.vmem %s456_s2, %s333_s21 }
   0xf   : > { %v180_v2 = vld [vmem:[%s169_s18] ss:$2 sm:$0xff]  ;;  %v334_v3 = vld [vmem:[%s169_s18 + $0x1] ss:$2 sm:$0xff] }
  0x10   : > { %v184_v4 = vmul.f32 %v362_v0, %v180_v2  ;;  %v216_v5 = vmul.f32 %v362_v0, %v334_v3 }
  0x12   : > { %v186_v6 = vadd.f32 %v363_v1, %v184_v4  ;;  %v217_v7 = vadd.f32 %v363_v1, %v216_v5 }
  0x14   : > { %v188_v8 = vmul.f32 0.70710677, %v186_v6  ;;  %v219_v9 = vmul.f32 0.70710677, %v217_v7  ;;  %v187_v55 = vmul.f32 0.5, %v186_v6  ;;  %v218_v58 = vmul.f32 0.5, %v217_v7 }
  0x16   : > { %v189_v10 = vand.u32 2147483647, %v188_v8  ;;  %v220_v11 = vand.u32 2147483647, %v219_v9  ;;  %vm211_vm0 = vcmp.ge.f32.partialorder %v188_v8, 0.0  ;;  %vm242_vm1 = vcmp.ge.f32.partialorder %v219_v9, 0.0 }
  0x18   : > { %v190_v12 = vmul.f32 0.3275911, %v189_v10  ;;  %v221_v13 = vmul.f32 0.3275911, %v220_v11  ;;  %v205_v21 = vsub.f32 0.0, %v189_v10  ;;  %v236_v24 = vsub.f32 0.0, %v220_v11 }
  0x1a   : > { %v191_v14 = vadd.f32 1.0, %v190_v12  ;;  %v222_v15 = vadd.f32 1.0, %v221_v13  ;;  %v206_v27 = vmul.f32 %v205_v21, %v189_v10  ;;  %v237_v30 = vmul.f32 %v236_v24, %v220_v11 }
  0x1c   : > { %364 = vrcp.f32 %v191_v14  ;;  %v207_v33 = vmul.f32 1.442695, %v206_v27  ;;  %v238_v36 = vmul.f32 1.442695, %v237_v30 }
  0x1d   : > { %366 = vrcp.f32 %v222_v15 }
  0x1e   : > { %368 = vpow2.f32 %v207_v33 }
  0x1f   : > { %370 = vpow2.f32 %v238_v36 }
  0x22   : > { %v365_v16 = vpop.eup %364 }
  0x23   : > { %v367_v17 = vpop.eup %366  ;;  %v193_v18 = vmul.f32 %v365_v16, %v191_v14 }
  0x24   : > { %v224_v19 = vmul.f32 %v367_v17, %v222_v15  ;;  %v369_v45 = vpop.eup %368 }
  0x25   : > { %v194_v20 = vsub.f32 2.0, %v193_v18  ;;  %v371_v47 = vpop.eup %370 }
  0x26   : > { %v225_v22 = vsub.f32 2.0, %v224_v19 }
  0x27   : > { %v195_v23 = vmul.f32 %v365_v16, %v194_v20 }
  0x28   : > { %v226_v25 = vmul.f32 %v367_v17, %v225_v22 }
  0x29   : > { %v196_v26 = vmul.f32 1.0614054, %v195_v23 }
  0x2a   : > { %v227_v28 = vmul.f32 1.0614054, %v226_v25 }
  0x2b   : > { %v197_v29 = vadd.f32 -1.4531521, %v196_v26 }
  0x2c   : > { %v228_v31 = vadd.f32 -1.4531521, %v227_v28 }
  0x2d   : > { %v198_v32 = vmul.f32 %v197_v29, %v195_v23 }
  0x2e   : > { %v229_v34 = vmul.f32 %v228_v31, %v226_v25 }
  0x2f   : > { %v199_v35 = vadd.f32 1.4214138, %v198_v32 }
  0x30   : > { %v230_v37 = vadd.f32 1.4214138, %v229_v34 }
  0x31   : > { %v200_v38 = vmul.f32 %v199_v35, %v195_v23 }
  0x32   : > { %v231_v39 = vmul.f32 %v230_v37, %v226_v25 }
  0x33   : > { %v201_v40 = vadd.f32 -0.28449672, %v200_v38 }
  0x34   : > { %v232_v41 = vadd.f32 -0.28449672, %v231_v39 }
  0x35   : > { %v202_v42 = vmul.f32 %v201_v40, %v195_v23 }
  0x36   : > { %v233_v43 = vmul.f32 %v232_v41, %v226_v25 }
  0x37   : > { %v203_v44 = vadd.f32 0.2548296, %v202_v42 }
  0x38   : > { %v234_v46 = vadd.f32 0.2548296, %v233_v43 }
  0x39   : > { %v204_v48 = vmul.f32 %v203_v44, %v195_v23 }
  0x3a   : > { %v235_v49 = vmul.f32 %v234_v46, %v226_v25 }
  0x3b   : > { %v209_v50 = vmul.f32 %v369_v45, %v204_v48 }
  0x3c   : > { %v240_v51 = vmul.f32 %v371_v47, %v235_v49 }
  0x3d   : > { %v210_v52 = vsub.f32 1.0, %v209_v50 }
  0x3e   : > { %v241_v53 = vsub.f32 1.0, %v240_v51 }
  0x3f   : > { %v212_v54 = vsub.f32 0.0, %v210_v52 }
  0x40   : > { %v243_v56 = vsub.f32 0.0, %v241_v53 }
  0x41   : > { %v213_v57 = vsel %vm211_vm0, %v210_v52, %v212_v54 }
  0x42   : > { %v214_v59 = vadd.f32 1.0, %v213_v57  ;;  %v244_v60 = vsel %vm242_vm1, %v241_v53, %v243_v56 }
  0x43   : > { %v245_v61 = vadd.f32 1.0, %v244_v60 }
  0x44   : > { %v215_v62 = vmul.f32 %v214_v59, %v187_v55 }
  0x45   : > { %v246_v63 = vmul.f32 %v245_v61, %v218_v58 }
  0x47   : > { %v247_v0 = vmax.f32 %v215_v62, %v246_v63 }
  0x49   : > { %248 = vst [vmem:[%s177_s24] sm:$0xff] %v247_v0 }
  0x4a PF: > { %s12_s11 = sadd.s32 1, %s394_s11   ;;  %s457_s9 = smov %s390_s10 }
  0x4b   : > { %p9_p5 = scmp.ge.s32.totalorder %s12_s11, 4   ;;  %s458_s10 = smov %s460_s12 }
  0x4d   :  { %11 = sbr.rel (!%p9_p5) target bundleno = 2 (0x2), region = 59 }

// kernel: unet_down.3
= control target key start
LH: loop header
LB: loop body
LE: loop exit
PB: predicated region body
PF: predicated region fallthrough
CT: control target
= control target key end

     0   :  { %s855_s21 = smov 0   ;;  %s857_s0 = smov 0   ;;  %s920_s0 = inlined_call_operand.vmem [shape: f32[2,16,4], index: 0, kind: input, shape index: {}, may-alias: {0,1,2}]   ;;  %s921_s1 = inlined_call_operand.vmem [shape: f32[2,16,4], index: 1, kind: input, shape index: {}, may-alias: {0,1,2}]   ;;  %s922_s2 = inlined_call_operand.vmem [shape: f32[2,16,4], index: 2, kind: input, shape index: {}, may-alias: {0,1,2}]   ;;  %s923_s3 = inlined_call_operand.vmem [shape: f32[12,128], index: 3, kind: input, shape index: {}]   ;;  %s924_s4 = inlined_call_operand.vmem [shape: f32[1,128], index: 4, kind: input, shape index: {}]   ;;  %s925_s5 = inlined_call_operand.vmem [shape: f32[2,16,128], index: 5, kind: output, shape index: {0}]   ;;  %s926_s6 = inlined_call_operand.vmem [shape: f32[2,2,128], index: 6, kind: output, shape index: {1}]  }
   0x1   :  { %s859_s22 = smov 0  }
   0x2 LB: > { %s29_s2 = sadd.s32 1, %s813_s0  ;;  %p742_p0 = scmp.ge.s32.totalorder %s817_s22, 1  ;;  %s817_s22 = sphi %s859_s22, %s17_s22   ;;  %s813_s0 = sphi %s857_s0, %s928_s0   ;;  %s809_s21 = sphi %s855_s21, %s927_s21  }
   0x3   : > { %p31_p1 = scmp.ge.s32.totalorder %s29_s2, 2  ;;  %p300_p2 = scmp.lt.s32.totalorder %s817_s22, 3 }
   0x5   : > { %s930_s2 = smov (%p31_p1, %s29_s2), 0  ;;  %p301_p3 = pnand %p742_p0, %p300_p2 }
   0x6   : > { %p384_p4 = scmp.lt.s32.totalorder (!%p301_p3), %s809_s21, 1 }
   0x7   : > { %304 = sbr.rel (%p301_p3) target bundleno = 181 (0xb5), region = 40 }
   0xc   : > { %vm463_vm0 = vcmask 1043456   ;;  %v521_v0 = vld [vmem:[%s923_s3 + $0x8] sm:$0xf]  ;;  %v457_v1 = vld [vmem:[%s923_s3 + $0x4] sm:$0xf]  ;;  %s932_s21 = smov (!%p384_p4, %s809_s21), 1 }
   0xd   : > { %758 = vmatpush.msk.msra.mxu2 %vm463_vm0, %v521_v0  ;;  %v456_v2 = vld [vmem:[%s923_s3] sm:$0xf]  ;;  %752 = vmatpush.msk.msra.mxu0 %vm463_vm0, %v457_v1  ;;  %s764_s29 = sshll.u32 %s932_s21, 4  ;;  %vm447_vm1 = vcmask 1046528   ;;  %vm458_vm2 = vcmask 31744   ;;  %vm441_vm3 = vcmask 1040384  }
   0xe   : > { %755 = vmatpush.msk.msra.mxu1 %vm463_vm0, %v456_v2  ;;  %768 = vmatpush.msk.msra.mxu3 %vm463_vm0, %v457_v1  ;;  %s391_s8 = scalar_lea.vmem %s921_s1, %s764_s29  ;;  %v819_v10 = vmov 0.0   ;;  %v794_v18 = vld [vmem:[%s924_s4] ss:$0 sm:$0xff]  ;;  %s417_s13 = scalar_lea.vmem %s925_s5, %s764_s29 }
   0xf   : > { %v425_v3 = vld [vmem:[%s391_s8] sm:$0xff]  ;;  %v426_v4 = vld [vmem:[%s391_s8 + $0x8] sm:$0xff]  ;;  %v453_v11 = vrot.slane %v819_v10, 1  ;;  %s751_s14 = sshll.u32 %s932_s21, 1 }
  0x10   : > { %v448_v5 = vrot.slane %v425_v3, 1  ;;  %v449_v6 = vrot.slane %v426_v4, 1  ;;  %753 = vmatmul.msk.f32.vlgmr.msra.gmra.mxu0 %vm458_vm2, %v425_v3  ;;  %v442_v7 = vrot.slane %v425_v3, 7  ;;  %754 = vmatmul.msk.f32.vlgmr.msra.gmra.mxu3 %vm458_vm2, %v426_v4  ;;  %v443_v12 = vrot.slane %v426_v4, 7  ;;  %s423_s17 = scalar_lea.vmem %s926_s6, %s751_s14 }
  0x12   : > { %v450_v8 = vsel %vm447_vm1, %v448_v5, %v449_v6  ;;  %v446_v9 = vsel %vm441_vm3, 0.0, %v442_v7  ;;  %v455_v13 = vsel %vm447_vm1, %v449_v6, %v453_v11  ;;  %v444_v14 = vsel %vm441_vm3, %v442_v7, %v443_v12 }
  0x13   : > { %759 = vmatmul.msk.f32.vlgmr.msra.gmra.mxu2 %vm458_vm2, %v450_v8  ;;  %756 = vmatmul.msk.f32.vlgmr.msra.gmra.mxu1 %vm458_vm2, %v446_v9 }
  0x1b   : > { %760 = vmatmul.msk.f32.gmra.mxu2 %vm458_vm2, %v455_v13  ;;  %757 = vmatmul.msk.f32.gmra.mxu1 %vm458_vm2, %v444_v14 }
  0x8d   : > { %v484_v15 = vpop.f32.mrf.mxu0 }
  0x90   : > { %v515_v16 = vpop.f32.mrf.mxu1 }
  0x91   : > { %v516_v17 = vadd.f32 %v515_v16, %v484_v15 }
  0x93   : > { %v487_v21 = vpop.f32.mrf.mxu3 }
  0x96   : > { %v547_v19 = vpop.f32.mrf.mxu2 }
  0x97   : > { %v553_v20 = vadd.f32 %v547_v19, %v516_v17 }
  0x98   : > { %v518_v22 = vpop.f32.mrf.mxu1 }
  0x99   : > { %v559_v23 = vadd.f32 %v794_v18, %v553_v20  ;;  %v519_v24 = vadd.f32 %v518_v22, %v487_v21 }
  0x9b   : > { %561 = vst [vmem:[%s417_s13] sm:$0xff] %v559_v23  ;;  %v570_v28 = vmul.f32 %v559_v23, %v559_v23 }
  0x9e   : > { %v550_v25 = vpop.f32.mrf.mxu2 }
  0x9f   : > { %v554_v26 = vadd.f32 %v550_v25, %v519_v24 }
  0xa1   : > { %v560_v27 = vadd.f32 %v794_v18, %v554_v26 }
  0xa3   : > { %562 = vst [vmem:[%s417_s13 + $0x8] sm:$0xff] %v560_v27  ;;  %v563_v29 = vadd.f32 %v560_v27, %v559_v23  ;;  %v571_v30 = vmul.f32 %v560_v27, %v560_v27 }
  0xa5   : > { %v564_v31 = vrot.slane %v563_v29, 4  ;;  %v572_v32 = vadd.f32 %v571_v30, %v570_v28 }
  0xa7   : > { %v565_v33 = vadd.f32 %v564_v31, %v563_v29  ;;  %v573_v34 = vrot.slane %v572_v32, 4 }
  0xa9   : > { %v566_v35 = vrot.slane %v565_v33, 2  ;;  %v574_v36 = vadd.f32 %v573_v34, %v572_v32 }
  0xab   : > { %v567_v37 = vadd.f32 %v566_v35, %v565_v33  ;;  %v575_v38 = vrot.slane %v574_v36, 2 }
  0xad   : > { %v568_v39 = vrot.slane %v567_v37, 1  ;;  %v576_v40 = vadd.f32 %v575_v38, %v574_v36 }
  0xaf   : > { %v577_v41 = vrot.slane %v576_v40, 1  ;;  %v569_v42 = vadd.f32 %v568_v39, %v567_v37 }
  0xb1   : > { %v578_v43 = vadd.f32 %v577_v41, %v576_v40 }
  0xb3   : > { %v579_v44 = vsel %vm441_vm3, %v569_v42, %v578_v43 }
  0xb4   : > { %580 = vst [vmem:[%s423_s17] sm:$0x3] %v579_v44 }
  0xb5 PF: > { %s17_s22 = sadd.s32 1, %s817_s22   ;;  %s927_s21 = smov %s813_s0 }
  0xb6   : > { %p14_p5 = scmp.ge.s32.totalorder %s17_s22, 4   ;;  %s928_s0 = smov %s930_s2 }
  0xb8   :  { %16 = sbr.rel (!%p14_p5) target bundleno = 2 (0x2), region = 88 }

</bundles_post_ra>
